<compile_context>
chip_gen: v6e
topology: v6e:2x2x1
jax: 0.10.0
libtpu: 0.0.40
codegen_flags: <defaults>
</compile_context>

<pallas_src>
import jax
import jax.numpy as jnp
from jax import lax
from jax.experimental import pallas as pl
from jax.experimental.pallas import tpu as pltpu

EPS = 1e-5
VMEM_LIMIT = 32 * 1024 * 1024   # explicit scoped-VMEM budget (safe on v5e/v6e/v7x)


# --------------------------------------------------------------------------------------
# Fused kernel: whole batch as one lane-dense (N*H, W*C) slab, one invocation.
# --------------------------------------------------------------------------------------

def _bottleneck_kernel(x_ref, b1_ref, b2_ref, b3_ref,
                       fold_in_ref, spread_in_ref, fold_mid_ref, spread_mid_ref,
                       mtop_ref, mbot_ref,
                       g1_ref, be1_ref, g2_ref, be2_ref, g3_ref, be3_ref,
                       y_ref):
    x = x_ref[...]                                        # (NH, W*Cin) f32
    nh = x.shape[0]
    w_dim = fold_in_ref.shape[0] // fold_in_ref.shape[1]  # = W
    inv_count = 1.0 / float(nh * w_dim)                   # N*H*W elements per channel

    def bn_relu(act, fold_ref, spread_ref, g_ref, b_ref):
        # Training-mode BatchNorm (biased variance, two-pass centered stats) folded into
        # a single per-element FMA, followed by ReLU.  fold: (W*C, C), spread: (C, W*C),
        # both exact 0/1 matrices; stats stay in f32 end to end.
        fold = fold_ref[...]
        spread = spread_ref[...]
        col_sum = jnp.sum(act, axis=0, keepdims=True)                             # (1, WC)
        mean_c = jnp.dot(col_sum, fold, preferred_element_type=jnp.float32) * inv_count
        mean_row = jnp.dot(mean_c, spread, preferred_element_type=jnp.float32)    # (1, WC)
        d = act - mean_row
        var_c = jnp.dot(jnp.sum(d * d, axis=0, keepdims=True), fold,
                        preferred_element_type=jnp.float32) * inv_count           # (1, C)
        scale_c = g_ref[...] * lax.rsqrt(var_c + EPS)                              # (1, C)
        shift_c = b_ref[...] - mean_c * scale_c
        scale_row = jnp.dot(scale_c, spread, preferred_element_type=jnp.float32)  # (1, WC)
        shift_row = jnp.dot(shift_c, spread, preferred_element_type=jnp.float32)
        return jnp.maximum(act * scale_row + shift_row, 0.0)

    # ---- bn_1 -> relu_1 -> conv_1 (1x1) as one matmul against block-diagonal B1 --------
    h1 = bn_relu(x, fold_in_ref, spread_in_ref, g1_ref, be1_ref)          # (NH, W*Cin)
    z1 = jnp.dot(h1.astype(jnp.bfloat16), b1_ref[...],
                 preferred_element_type=jnp.float32)                      # (NH, W*Cmid)

    # ---- bn_2 -> relu_2 -> conv_2 (3x3, stride 1, pad 1) --------------------------------
    # W-direction taps + zero padding folded into banded B2[kh]; the +/-1 H-taps are XLU
    # sublane rolls gated by precomputed border masks (no shift matmuls, no padded copies).
    h2 = bn_relu(z1, fold_mid_ref, spread_mid_ref, g2_ref, be2_ref)
    hb = h2.astype(jnp.bfloat16)
    r0 = jnp.dot(hb, b2_ref[0], preferred_element_type=jnp.float32)       # kh = 0 tap
    r1 = jnp.dot(hb, b2_ref[1], preferred_element_type=jnp.float32)       # kh = 1 tap
    r2 = jnp.dot(hb, b2_ref[2], preferred_element_type=jnp.float32)       # kh = 2 tap
    z2 = (mtop_ref[...] * pltpu.roll(r0, shift=1, axis=0)                 # z[h] += r0[h-1]
          + r1
          + mbot_ref[...] * pltpu.roll(r2, shift=nh - 1, axis=0))         # z[h] += r2[h+1]

    # ---- bn_3 -> relu_3 -> conv_3 (1x1) + identity residual (lane-dense store) ----------
    h3 = bn_relu(z2, fold_mid_ref, spread_mid_ref, g3_ref, be3_ref)
    y_ref[...] = x + jnp.dot(h3.astype(jnp.bfloat16), b3_ref[...],
                             preferred_element_type=jnp.float32)          # (NH, W*Cout)


# --------------------------------------------------------------------------------------
# Wrapper
# --------------------------------------------------------------------------------------

def prepare_params(params, width):
    """Build structured conv weights + BN fold matrices ONCE, off the jitted hot path."""
    g1, be1, w1, g2, be2, w2, g3, be3, w3 = params
    cin, cmid = w1.shape
    W = width
    f32 = jnp.float32

    eye_w = jnp.eye(W, dtype=f32)
    b1 = jnp.kron(eye_w, w1).astype(jnp.bfloat16)                  # (W*Cin , W*Cmid) block-diag
    b3 = jnp.kron(eye_w, w3).astype(jnp.bfloat16)                  # (W*Cmid, W*Cout) block-diag

    wi = jnp.arange(W)
    kw = wi[:, None] - wi[None, :] + 1                             # kw tap: in-col vs out-col
    valid = (kw >= 0) & (kw <= 2)
    blocks = w2[:, jnp.clip(kw, 0, 2)]                             # (3, Win, Wout, Cmid, Cmid)
    blocks = jnp.where(valid[None, :, :, None, None], blocks, 0.0)
    b2 = blocks.transpose(0, 1, 3, 2, 4).reshape(3, W * cmid, W * cmid).astype(jnp.bfloat16)

    # exact 0/1 fold matrices: lane-dense (1, W*C) row  <->  per-channel (1, C) row
    fold_in = jnp.kron(jnp.ones((W, 1), f32), jnp.eye(cin, dtype=f32))    # (W*Cin , Cin)
    fold_mid = jnp.kron(jnp.ones((W, 1), f32), jnp.eye(cmid, dtype=f32))  # (W*Cmid, Cmid)
    spread_in = fold_in.T
    spread_mid = fold_mid.T

    return (b1, b2, b3, fold_in, spread_in, fold_mid, spread_mid,
            g1.astype(f32), be1.astype(f32), g2.astype(f32), be2.astype(f32),
            g3.astype(f32), be3.astype(f32))


@jax.jit
def bottleneck_residual_block(x_nchw, prep):
    (b1, b2, b3, fold_in, spread_in, fold_mid, spread_mid,
     g1, be1, g2, be2, g3, be3) = prep
    N, Cin, H, W = x_nchw.shape
    Cout = b3.shape[1] // W
    NH = N * H
    WCo = W * Cout

    # NCHW -> lane-dense (N*H, W*C): channels ride the fast lane axis, fully packed.
    x_lane = jnp.transpose(x_nchw, (0, 2, 3, 1)).reshape(NH, W * Cin)

    # border masks for the +/-1 H-taps of the 3x3 conv (top/bottom zero padding, and kill
    # cross-image wraparound of the in-kernel rolls).
    h_idx = jnp.arange(NH, dtype=jnp.int32) % H
    mtop = (h_idx != 0).astype(jnp.float32)[:, None]          # (NH, 1)
    mbot = (h_idx != H - 1).astype(jnp.float32)[:, None]      # (NH, 1)

    operands = (x_lane, b1, b2, b3, fold_in, spread_in, fold_mid, spread_mid,
                mtop, mbot, g1, be1, g2, be2, g3, be3)

    def _full(a):
        nd = a.ndim
        return pl.BlockSpec(a.shape, lambda i, nd=nd: (0,) * nd)

    y_lane = pl.pallas_call(
        _bottleneck_kernel,
        out_shape=jax.ShapeDtypeStruct((NH, WCo), jnp.float32),
        grid=(1,),
        in_specs=[_full(a) for a in operands],
        out_specs=pl.BlockSpec((NH, WCo), lambda i: (0, 0)),
        compiler_params=pltpu.CompilerParams(
            dimension_semantics=("arbitrary",),
            vmem_limit_bytes=VMEM_LIMIT),
    )(*operands)

    return y_lane.reshape(N, H, W, Cout).transpose(0, 3, 1, 2)    # back to NCHW


# --------------------------------------------------------------------------------------
# Parameters / reference / self-test
# --------------------------------------------------------------------------------------

def init_params(key, cin, cmid, cout):
    ks = jax.random.split(key, 9)
    g1 = 1.0 + 0.1 * jax.random.normal(ks[0], (1, cin), jnp.float32)
    b1 = 0.1 * jax.random.normal(ks[1], (1, cin), jnp.float32)
    w1 = 0.1 * jax.random.normal(ks[2], (cin, cmid), jnp.float32)         # conv_1 as (Cin, Cmid)
    g2 = 1.0 + 0.1 * jax.random.normal(ks[3], (1, cmid), jnp.float32)
    b2 = 0.1 * jax.random.normal(ks[4], (1, cmid), jnp.float32)
    w2 = 0.1 * jax.random.normal(ks[5], (3, 3, cmid, cmid), jnp.float32)  # conv_2, HWIO layout
    g3 = 1.0 + 0.1 * jax.random.normal(ks[6], (1, cmid), jnp.float32)
    b3 = 0.1 * jax.random.normal(ks[7], (1, cmid), jnp.float32)
    w3 = 0.1 * jax.random.normal(ks[8], (cmid, cout), jnp.float32)        # conv_3 as (Cmid, Cout)
    return (g1, b1, w1, g2, b2, w2, g3, b3, w3)


def reference(x_nchw, params):
    # pure-JAX f32 reference of the same forward pass (for the correctness check)
    g1, b1, w1, g2, b2, w2, g3, b3, w3 = params
    x = jnp.transpose(x_nchw, (0, 2, 3, 1))

    def bn_relu(t, g, b):
        mean = jnp.mean(t, axis=(0, 1, 2), keepdims=True)
        var = jnp.mean((t - mean) ** 2, axis=(0, 1, 2), keepdims=True)
        y = (t - mean) * lax.rsqrt(var + EPS) * g.reshape(1, 1, 1, -1) + b.reshape(1, 1, 1, -1)
        return jnp.maximum(y, 0.0)

    h = bn_relu(x, g1, b1)
    h = jnp.einsum('nhwc,cd->nhwd', h, w1)
    h = bn_relu(h, g2, b2)
    h = lax.conv_general_dilated(h, w2, (1, 1), 'SAME',
                                 dimension_numbers=('NHWC', 'HWIO', 'NHWC'))
    h = bn_relu(h, g3, b3)
    h = jnp.einsum('nhwc,cd->nhwd', h, w3)
    return jnp.transpose(x + h, (0, 3, 1, 2))


if __name__ == "__main__":
    in_channels = 16
    mid_channels = in_channels // 4     # module default when mid_channels is None
    out_channels = in_channels          # module default when out_channels is None
    N, H, W = 2, 16, 16

    key = jax.random.PRNGKey(0)
    kx, kp = jax.random.split(key)
    x = jax.random.normal(kx, (N, in_channels, H, W), jnp.float32)   # NCHW, like PyTorch
    params = init_params(kp, in_channels, mid_channels, out_channels)
    prep = prepare_params(params, W)                                 # hoisted, built once

    y = bottleneck_residual_block(x, prep)
    y = jax.block_until_ready(y)
    assert y.shape == (N, out_channels, H, W)

    y_ref = reference(x, params)
    err = float(jnp.max(jnp.abs(y - y_ref)))
    # conv matmul operands run in bf16 on the MXU; BN/stat math is f32
    assert err < 5e-2, f"max abs err vs reference: {err}"
    print("KERNEL_OK")
</pallas_src>

<mosaic_0001>
module attributes {stable_mosaic.version = 11 : i64} {
  func.func @_bottleneck_kernel(%arg0: i32, %arg1: memref<32x256xf32, #tpu.memory_space<vmem>>, %arg2: memref<256x64xbf16, #tpu.memory_space<vmem>>, %arg3: memref<3x64x64xbf16, #tpu.memory_space<vmem>>, %arg4: memref<64x256xbf16, #tpu.memory_space<vmem>>, %arg5: memref<256x16xf32, #tpu.memory_space<vmem>>, %arg6: memref<16x256xf32, #tpu.memory_space<vmem>>, %arg7: memref<64x4xf32, #tpu.memory_space<vmem>>, %arg8: memref<4x64xf32, #tpu.memory_space<vmem>>, %arg9: memref<32x1xf32, #tpu.memory_space<vmem>>, %arg10: memref<32x1xf32, #tpu.memory_space<vmem>>, %arg11: memref<1x16xf32, #tpu.memory_space<vmem>>, %arg12: memref<1x16xf32, #tpu.memory_space<vmem>>, %arg13: memref<1x4xf32, #tpu.memory_space<vmem>>, %arg14: memref<1x4xf32, #tpu.memory_space<vmem>>, %arg15: memref<1x4xf32, #tpu.memory_space<vmem>>, %arg16: memref<1x4xf32, #tpu.memory_space<vmem>>, %arg17: memref<32x256xf32, #tpu.memory_space<vmem>>) attributes {dimension_semantics = [#tpu.dimension_semantics<arbitrary>], iteration_bounds = array<i64: 1>, scalar_prefetch = 0 : i64, scratch_operands = 0 : i64, tpu.core_type = #tpu.core_type<tc>, window_params = [{pipeline_mode = #tpu.pipeline_mode<synchronous>, transform_indices = @transform_0, window_bounds = array<i64: 32, 256>}, {pipeline_mode = #tpu.pipeline_mode<synchronous>, transform_indices = @transform_1, window_bounds = array<i64: 256, 64>}, {pipeline_mode = #tpu.pipeline_mode<synchronous>, transform_indices = @transform_2, window_bounds = array<i64: 3, 64, 64>}, {pipeline_mode = #tpu.pipeline_mode<synchronous>, transform_indices = @transform_3, window_bounds = array<i64: 64, 256>}, {pipeline_mode = #tpu.pipeline_mode<synchronous>, transform_indices = @transform_4, window_bounds = array<i64: 256, 16>}, {pipeline_mode = #tpu.pipeline_mode<synchronous>, transform_indices = @transform_5, window_bounds = array<i64: 16, 256>}, {pipeline_mode = #tpu.pipeline_mode<synchronous>, transform_indices = @transform_6, window_bounds = array<i64: 64, 4>}, {pipeline_mode = #tpu.pipeline_mode<synchronous>, transform_indices = @transform_7, window_bounds = array<i64: 4, 64>}, {pipeline_mode = #tpu.pipeline_mode<synchronous>, transform_indices = @transform_8, window_bounds = array<i64: 32, 1>}, {pipeline_mode = #tpu.pipeline_mode<synchronous>, transform_indices = @transform_9, window_bounds = array<i64: 32, 1>}, {pipeline_mode = #tpu.pipeline_mode<synchronous>, transform_indices = @transform_10, window_bounds = array<i64: 1, 16>}, {pipeline_mode = #tpu.pipeline_mode<synchronous>, transform_indices = @transform_11, window_bounds = array<i64: 1, 16>}, {pipeline_mode = #tpu.pipeline_mode<synchronous>, transform_indices = @transform_12, window_bounds = array<i64: 1, 4>}, {pipeline_mode = #tpu.pipeline_mode<synchronous>, transform_indices = @transform_13, window_bounds = array<i64: 1, 4>}, {pipeline_mode = #tpu.pipeline_mode<synchronous>, transform_indices = @transform_14, window_bounds = array<i64: 1, 4>}, {pipeline_mode = #tpu.pipeline_mode<synchronous>, transform_indices = @transform_15, window_bounds = array<i64: 1, 4>}, {pipeline_mode = #tpu.pipeline_mode<synchronous>, transform_indices = @transform_16, window_bounds = array<i64: 32, 256>}]} {
    %c0 = arith.constant 0 : index
    %c0_0 = arith.constant 0 : index
    %0 = vector.load %arg1[%c0, %c0_0] : memref<32x256xf32, #tpu.memory_space<vmem>>, vector<32x256xf32>
    %c0_1 = arith.constant 0 : index
    %c0_2 = arith.constant 0 : index
    %1 = vector.load %arg5[%c0_1, %c0_2] : memref<256x16xf32, #tpu.memory_space<vmem>>, vector<256x16xf32>
    %c0_3 = arith.constant 0 : index
    %c0_4 = arith.constant 0 : index
    %2 = vector.load %arg6[%c0_3, %c0_4] : memref<16x256xf32, #tpu.memory_space<vmem>>, vector<16x256xf32>
    %cst = arith.constant dense<0.000000e+00> : vector<256xf32>
    %3 = vector.multi_reduction <add>, %0, %cst [0] : vector<32x256xf32> to vector<256xf32>
    %4 = vector.shape_cast %3 : vector<256xf32> to vector<1x256xf32>
    %cst_5 = arith.constant dense<0.000000e+00> : vector<1x16xf32>
    %5 = tpu.matmul %4, %1, %cst_5 {dimension_numbers = #tpu.dot_dimension_numbers<[1], [0], [0], [1], [0, 0, 1, 1], [], []>} : vector<1x256xf32>, vector<256x16xf32>, vector<1x16xf32> -> vector<1x16xf32>
    %cst_6 = arith.constant 0.001953125 : f32
    %6 = vector.broadcast %cst_6 : f32 to vector<1x16xf32>
    %7 = arith.mulf %5, %6 : vector<1x16xf32>
    %cst_7 = arith.constant dense<0.000000e+00> : vector<1x256xf32>
    %8 = tpu.matmul %7, %2, %cst_7 {dimension_numbers = #tpu.dot_dimension_numbers<[1], [0], [0], [1], [0, 0, 1, 1], [], []>} : vector<1x16xf32>, vector<16x256xf32>, vector<1x256xf32> -> vector<1x256xf32>
    %9 = vector.broadcast %8 : vector<1x256xf32> to vector<32x256xf32>
    %10 = arith.subf %0, %9 : vector<32x256xf32>
    %11 = arith.mulf %10, %10 : vector<32x256xf32>
    %cst_8 = arith.constant dense<0.000000e+00> : vector<256xf32>
    %12 = vector.multi_reduction <add>, %11, %cst_8 [0] : vector<32x256xf32> to vector<256xf32>
    %13 = vector.shape_cast %12 : vector<256xf32> to vector<1x256xf32>
    %cst_9 = arith.constant dense<0.000000e+00> : vector<1x16xf32>
    %14 = tpu.matmul %13, %1, %cst_9 {dimension_numbers = #tpu.dot_dimension_numbers<[1], [0], [0], [1], [0, 0, 1, 1], [], []>} : vector<1x256xf32>, vector<256x16xf32>, vector<1x16xf32> -> vector<1x16xf32>
    %cst_10 = arith.constant 0.001953125 : f32
    %15 = vector.broadcast %cst_10 : f32 to vector<1x16xf32>
    %16 = arith.mulf %14, %15 : vector<1x16xf32>
    %c0_11 = arith.constant 0 : index
    %c0_12 = arith.constant 0 : index
    %17 = vector.load %arg11[%c0_11, %c0_12] : memref<1x16xf32, #tpu.memory_space<vmem>>, vector<1x16xf32>
    %cst_13 = arith.constant 9.99999974E-6 : f32
    %18 = vector.broadcast %cst_13 : f32 to vector<1x16xf32>
    %19 = arith.addf %16, %18 : vector<1x16xf32>
    %20 = math.rsqrt %19 : vector<1x16xf32>
    %21 = arith.mulf %17, %20 : vector<1x16xf32>
    %c0_14 = arith.constant 0 : index
    %c0_15 = arith.constant 0 : index
    %22 = vector.load %arg12[%c0_14, %c0_15] : memref<1x16xf32, #tpu.memory_space<vmem>>, vector<1x16xf32>
    %23 = arith.mulf %7, %21 : vector<1x16xf32>
    %24 = arith.subf %22, %23 : vector<1x16xf32>
    %cst_16 = arith.constant dense<0.000000e+00> : vector<1x256xf32>
    %25 = tpu.matmul %21, %2, %cst_16 {dimension_numbers = #tpu.dot_dimension_numbers<[1], [0], [0], [1], [0, 0, 1, 1], [], []>} : vector<1x16xf32>, vector<16x256xf32>, vector<1x256xf32> -> vector<1x256xf32>
    %cst_17 = arith.constant dense<0.000000e+00> : vector<1x256xf32>
    %26 = tpu.matmul %24, %2, %cst_17 {dimension_numbers = #tpu.dot_dimension_numbers<[1], [0], [0], [1], [0, 0, 1, 1], [], []>} : vector<1x16xf32>, vector<16x256xf32>, vector<1x256xf32> -> vector<1x256xf32>
    %27 = vector.broadcast %25 : vector<1x256xf32> to vector<32x256xf32>
    %28 = arith.mulf %0, %27 : vector<32x256xf32>
    %29 = vector.broadcast %26 : vector<1x256xf32> to vector<32x256xf32>
    %30 = arith.addf %28, %29 : vector<32x256xf32>
    %cst_18 = arith.constant 0.000000e+00 : f32
    %31 = vector.broadcast %cst_18 : f32 to vector<32x256xf32>
    %32 = arith.maximumf %30, %31 : vector<32x256xf32>
    %33 = arith.truncf %32 : vector<32x256xf32> to vector<32x256xbf16>
    %c0_19 = arith.constant 0 : index
    %c0_20 = arith.constant 0 : index
    %34 = vector.load %arg2[%c0_19, %c0_20] : memref<256x64xbf16, #tpu.memory_space<vmem>>, vector<256x64xbf16>
    %cst_21 = arith.constant dense<0.000000e+00> : vector<32x64xf32>
    %35 = tpu.matmul %33, %34, %cst_21 {dimension_numbers = #tpu.dot_dimension_numbers<[1], [0], [0], [1], [0, 0, 1, 1], [], []>} : vector<32x256xbf16>, vector<256x64xbf16>, vector<32x64xf32> -> vector<32x64xf32>
    %c0_22 = arith.constant 0 : index
    %c0_23 = arith.constant 0 : index
    %36 = vector.load %arg7[%c0_22, %c0_23] : memref<64x4xf32, #tpu.memory_space<vmem>>, vector<64x4xf32>
    %c0_24 = arith.constant 0 : index
    %c0_25 = arith.constant 0 : index
    %37 = vector.load %arg8[%c0_24, %c0_25] : memref<4x64xf32, #tpu.memory_space<vmem>>, vector<4x64xf32>
    %cst_26 = arith.constant dense<0.000000e+00> : vector<64xf32>
    %38 = vector.multi_reduction <add>, %35, %cst_26 [0] : vector<32x64xf32> to vector<64xf32>
    %39 = vector.shape_cast %38 : vector<64xf32> to vector<1x64xf32>
    %cst_27 = arith.constant dense<0.000000e+00> : vector<1x4xf32>
    %40 = tpu.matmul %39, %36, %cst_27 {dimension_numbers = #tpu.dot_dimension_numbers<[1], [0], [0], [1], [0, 0, 1, 1], [], []>} : vector<1x64xf32>, vector<64x4xf32>, vector<1x4xf32> -> vector<1x4xf32>
    %cst_28 = arith.constant 0.001953125 : f32
    %41 = vector.broadcast %cst_28 : f32 to vector<1x4xf32>
    %42 = arith.mulf %40, %41 : vector<1x4xf32>
    %cst_29 = arith.constant dense<0.000000e+00> : vector<1x64xf32>
    %43 = tpu.matmul %42, %37, %cst_29 {dimension_numbers = #tpu.dot_dimension_numbers<[1], [0], [0], [1], [0, 0, 1, 1], [], []>} : vector<1x4xf32>, vector<4x64xf32>, vector<1x64xf32> -> vector<1x64xf32>
    %44 = vector.broadcast %43 : vector<1x64xf32> to vector<32x64xf32>
    %45 = arith.subf %35, %44 : vector<32x64xf32>
    %46 = arith.mulf %45, %45 : vector<32x64xf32>
    %cst_30 = arith.constant dense<0.000000e+00> : vector<64xf32>
    %47 = vector.multi_reduction <add>, %46, %cst_30 [0] : vector<32x64xf32> to vector<64xf32>
    %48 = vector.shape_cast %47 : vector<64xf32> to vector<1x64xf32>
    %cst_31 = arith.constant dense<0.000000e+00> : vector<1x4xf32>
    %49 = tpu.matmul %48, %36, %cst_31 {dimension_numbers = #tpu.dot_dimension_numbers<[1], [0], [0], [1], [0, 0, 1, 1], [], []>} : vector<1x64xf32>, vector<64x4xf32>, vector<1x4xf32> -> vector<1x4xf32>
    %cst_32 = arith.constant 0.001953125 : f32
    %50 = vector.broadcast %cst_32 : f32 to vector<1x4xf32>
    %51 = arith.mulf %49, %50 : vector<1x4xf32>
    %c0_33 = arith.constant 0 : index
    %c0_34 = arith.constant 0 : index
    %52 = vector.load %arg13[%c0_33, %c0_34] : memref<1x4xf32, #tpu.memory_space<vmem>>, vector<1x4xf32>
    %cst_35 = arith.constant 9.99999974E-6 : f32
    %53 = vector.broadcast %cst_35 : f32 to vector<1x4xf32>
    %54 = arith.addf %51, %53 : vector<1x4xf32>
    %55 = math.rsqrt %54 : vector<1x4xf32>
    %56 = arith.mulf %52, %55 : vector<1x4xf32>
    %c0_36 = arith.constant 0 : index
    %c0_37 = arith.constant 0 : index
    %57 = vector.load %arg14[%c0_36, %c0_37] : memref<1x4xf32, #tpu.memory_space<vmem>>, vector<1x4xf32>
    %58 = arith.mulf %42, %56 : vector<1x4xf32>
    %59 = arith.subf %57, %58 : vector<1x4xf32>
    %cst_38 = arith.constant dense<0.000000e+00> : vector<1x64xf32>
    %60 = tpu.matmul %56, %37, %cst_38 {dimension_numbers = #tpu.dot_dimension_numbers<[1], [0], [0], [1], [0, 0, 1, 1], [], []>} : vector<1x4xf32>, vector<4x64xf32>, vector<1x64xf32> -> vector<1x64xf32>
    %cst_39 = arith.constant dense<0.000000e+00> : vector<1x64xf32>
    %61 = tpu.matmul %59, %37, %cst_39 {dimension_numbers = #tpu.dot_dimension_numbers<[1], [0], [0], [1], [0, 0, 1, 1], [], []>} : vector<1x4xf32>, vector<4x64xf32>, vector<1x64xf32> -> vector<1x64xf32>
    %62 = vector.broadcast %60 : vector<1x64xf32> to vector<32x64xf32>
    %63 = arith.mulf %35, %62 : vector<32x64xf32>
    %64 = vector.broadcast %61 : vector<1x64xf32> to vector<32x64xf32>
    %65 = arith.addf %63, %64 : vector<32x64xf32>
    %cst_40 = arith.constant 0.000000e+00 : f32
    %66 = vector.broadcast %cst_40 : f32 to vector<32x64xf32>
    %67 = arith.maximumf %65, %66 : vector<32x64xf32>
    %68 = arith.truncf %67 : vector<32x64xf32> to vector<32x64xbf16>
    %c0_41 = arith.constant 0 : index
    %c0_42 = arith.constant 0 : index
    %c0_43 = arith.constant 0 : index
    %69 = vector.load %arg3[%c0_41, %c0_42, %c0_43] : memref<3x64x64xbf16, #tpu.memory_space<vmem>>, vector<1x64x64xbf16>
    %70 = vector.shape_cast %69 : vector<1x64x64xbf16> to vector<64x64xbf16>
    %cst_44 = arith.constant dense<0.000000e+00> : vector<32x64xf32>
    %71 = tpu.matmul %68, %70, %cst_44 {dimension_numbers = #tpu.dot_dimension_numbers<[1], [0], [0], [1], [0, 0, 1, 1], [], []>} : vector<32x64xbf16>, vector<64x64xbf16>, vector<32x64xf32> -> vector<32x64xf32>
    %c1 = arith.constant 1 : index
    %c0_45 = arith.constant 0 : index
    %c0_46 = arith.constant 0 : index
    %72 = vector.load %arg3[%c1, %c0_45, %c0_46] : memref<3x64x64xbf16, #tpu.memory_space<vmem>>, vector<1x64x64xbf16>
    %73 = vector.shape_cast %72 : vector<1x64x64xbf16> to vector<64x64xbf16>
    %cst_47 = arith.constant dense<0.000000e+00> : vector<32x64xf32>
    %74 = tpu.matmul %68, %73, %cst_47 {dimension_numbers = #tpu.dot_dimension_numbers<[1], [0], [0], [1], [0, 0, 1, 1], [], []>} : vector<32x64xbf16>, vector<64x64xbf16>, vector<32x64xf32> -> vector<32x64xf32>
    %c2 = arith.constant 2 : index
    %c0_48 = arith.constant 0 : index
    %c0_49 = arith.constant 0 : index
    %75 = vector.load %arg3[%c2, %c0_48, %c0_49] : memref<3x64x64xbf16, #tpu.memory_space<vmem>>, vector<1x64x64xbf16>
    %76 = vector.shape_cast %75 : vector<1x64x64xbf16> to vector<64x64xbf16>
    %cst_50 = arith.constant dense<0.000000e+00> : vector<32x64xf32>
    %77 = tpu.matmul %68, %76, %cst_50 {dimension_numbers = #tpu.dot_dimension_numbers<[1], [0], [0], [1], [0, 0, 1, 1], [], []>} : vector<32x64xbf16>, vector<64x64xbf16>, vector<32x64xf32> -> vector<32x64xf32>
    %c0_51 = arith.constant 0 : index
    %c0_52 = arith.constant 0 : index
    %78 = vector.load %arg9[%c0_51, %c0_52] : memref<32x1xf32, #tpu.memory_space<vmem>>, vector<32x1xf32>
    %c1_i32 = arith.constant 1 : i32
    %79 = tpu.dynamic_rotate %71 by %c1_i32 dim 0 : vector<32x64xf32>, i32 -> vector<32x64xf32>
    %80 = vector.broadcast %78 : vector<32x1xf32> to vector<32x64xf32>
    %81 = arith.mulf %80, %79 : vector<32x64xf32>
    %82 = arith.addf %81, %74 : vector<32x64xf32>
    %c0_53 = arith.constant 0 : index
    %c0_54 = arith.constant 0 : index
    %83 = vector.load %arg10[%c0_53, %c0_54] : memref<32x1xf32, #tpu.memory_space<vmem>>, vector<32x1xf32>
    %c31_i32 = arith.constant 31 : i32
    %84 = tpu.dynamic_rotate %77 by %c31_i32 dim 0 : vector<32x64xf32>, i32 -> vector<32x64xf32>
    %85 = vector.broadcast %83 : vector<32x1xf32> to vector<32x64xf32>
    %86 = arith.mulf %85, %84 : vector<32x64xf32>
    %87 = arith.addf %82, %86 : vector<32x64xf32>
    %c0_55 = arith.constant 0 : index
    %c0_56 = arith.constant 0 : index
    %88 = vector.load %arg7[%c0_55, %c0_56] : memref<64x4xf32, #tpu.memory_space<vmem>>, vector<64x4xf32>
    %c0_57 = arith.constant 0 : index
    %c0_58 = arith.constant 0 : index
    %89 = vector.load %arg8[%c0_57, %c0_58] : memref<4x64xf32, #tpu.memory_space<vmem>>, vector<4x64xf32>
    %cst_59 = arith.constant dense<0.000000e+00> : vector<64xf32>
    %90 = vector.multi_reduction <add>, %87, %cst_59 [0] : vector<32x64xf32> to vector<64xf32>
    %91 = vector.shape_cast %90 : vector<64xf32> to vector<1x64xf32>
    %cst_60 = arith.constant dense<0.000000e+00> : vector<1x4xf32>
    %92 = tpu.matmul %91, %88, %cst_60 {dimension_numbers = #tpu.dot_dimension_numbers<[1], [0], [0], [1], [0, 0, 1, 1], [], []>} : vector<1x64xf32>, vector<64x4xf32>, vector<1x4xf32> -> vector<1x4xf32>
    %cst_61 = arith.constant 0.001953125 : f32
    %93 = vector.broadcast %cst_61 : f32 to vector<1x4xf32>
    %94 = arith.mulf %92, %93 : vector<1x4xf32>
    %cst_62 = arith.constant dense<0.000000e+00> : vector<1x64xf32>
    %95 = tpu.matmul %94, %89, %cst_62 {dimension_numbers = #tpu.dot_dimension_numbers<[1], [0], [0], [1], [0, 0, 1, 1], [], []>} : vector<1x4xf32>, vector<4x64xf32>, vector<1x64xf32> -> vector<1x64xf32>
    %96 = vector.broadcast %95 : vector<1x64xf32> to vector<32x64xf32>
    %97 = arith.subf %87, %96 : vector<32x64xf32>
    %98 = arith.mulf %97, %97 : vector<32x64xf32>
    %cst_63 = arith.constant dense<0.000000e+00> : vector<64xf32>
    %99 = vector.multi_reduction <add>, %98, %cst_63 [0] : vector<32x64xf32> to vector<64xf32>
    %100 = vector.shape_cast %99 : vector<64xf32> to vector<1x64xf32>
    %cst_64 = arith.constant dense<0.000000e+00> : vector<1x4xf32>
    %101 = tpu.matmul %100, %88, %cst_64 {dimension_numbers = #tpu.dot_dimension_numbers<[1], [0], [0], [1], [0, 0, 1, 1], [], []>} : vector<1x64xf32>, vector<64x4xf32>, vector<1x4xf32> -> vector<1x4xf32>
    %cst_65 = arith.constant 0.001953125 : f32
    %102 = vector.broadcast %cst_65 : f32 to vector<1x4xf32>
    %103 = arith.mulf %101, %102 : vector<1x4xf32>
    %c0_66 = arith.constant 0 : index
    %c0_67 = arith.constant 0 : index
    %104 = vector.load %arg15[%c0_66, %c0_67] : memref<1x4xf32, #tpu.memory_space<vmem>>, vector<1x4xf32>
    %cst_68 = arith.constant 9.99999974E-6 : f32
    %105 = vector.broadcast %cst_68 : f32 to vector<1x4xf32>
    %106 = arith.addf %103, %105 : vector<1x4xf32>
    %107 = math.rsqrt %106 : vector<1x4xf32>
    %108 = arith.mulf %104, %107 : vector<1x4xf32>
    %c0_69 = arith.constant 0 : index
    %c0_70 = arith.constant 0 : index
    %109 = vector.load %arg16[%c0_69, %c0_70] : memref<1x4xf32, #tpu.memory_space<vmem>>, vector<1x4xf32>
    %110 = arith.mulf %94, %108 : vector<1x4xf32>
    %111 = arith.subf %109, %110 : vector<1x4xf32>
    %cst_71 = arith.constant dense<0.000000e+00> : vector<1x64xf32>
    %112 = tpu.matmul %108, %89, %cst_71 {dimension_numbers = #tpu.dot_dimension_numbers<[1], [0], [0], [1], [0, 0, 1, 1], [], []>} : vector<1x4xf32>, vector<4x64xf32>, vector<1x64xf32> -> vector<1x64xf32>
    %cst_72 = arith.constant dense<0.000000e+00> : vector<1x64xf32>
    %113 = tpu.matmul %111, %89, %cst_72 {dimension_numbers = #tpu.dot_dimension_numbers<[1], [0], [0], [1], [0, 0, 1, 1], [], []>} : vector<1x4xf32>, vector<4x64xf32>, vector<1x64xf32> -> vector<1x64xf32>
    %114 = vector.broadcast %112 : vector<1x64xf32> to vector<32x64xf32>
    %115 = arith.mulf %87, %114 : vector<32x64xf32>
    %116 = vector.broadcast %113 : vector<1x64xf32> to vector<32x64xf32>
    %117 = arith.addf %115, %116 : vector<32x64xf32>
    %cst_73 = arith.constant 0.000000e+00 : f32
    %118 = vector.broadcast %cst_73 : f32 to vector<32x64xf32>
    %119 = arith.maximumf %117, %118 : vector<32x64xf32>
    %120 = arith.truncf %119 : vector<32x64xf32> to vector<32x64xbf16>
    %c0_74 = arith.constant 0 : index
    %c0_75 = arith.constant 0 : index
    %121 = vector.load %arg4[%c0_74, %c0_75] : memref<64x256xbf16, #tpu.memory_space<vmem>>, vector<64x256xbf16>
    %cst_76 = arith.constant dense<0.000000e+00> : vector<32x256xf32>
    %122 = tpu.matmul %120, %121, %cst_76 {dimension_numbers = #tpu.dot_dimension_numbers<[1], [0], [0], [1], [0, 0, 1, 1], [], []>} : vector<32x64xbf16>, vector<64x256xbf16>, vector<32x256xf32> -> vector<32x256xf32>
    %123 = arith.addf %0, %122 : vector<32x256xf32>
    %c0_77 = arith.constant 0 : index
    %c0_78 = arith.constant 0 : index
    %124 = vector.load %arg17[%c0_77, %c0_78] : memref<32x256xf32, #tpu.memory_space<vmem>>, vector<32x256xf32>
    tpu.vector_store %arg17[%c0_77, %c0_78], %123 {strides = array<i32>} : memref<32x256xf32, #tpu.memory_space<vmem>>, vector<32x256xf32>,
    return
  }
  func.func @transform_0(%arg0: i32) -> (i32, i32) {
    %c0_i32 = arith.constant 0 : i32
    %c0_i32_0 = arith.constant 0 : i32
    %c0_i32_1 = arith.constant 0 : i32
    return %c0_i32, %c0_i32_0 : i32, i32
  }
  func.func @transform_1(%arg0: i32) -> (i32, i32) {
    %c0_i32 = arith.constant 0 : i32
    %c0_i32_0 = arith.constant 0 : i32
    %c0_i32_1 = arith.constant 0 : i32
    return %c0_i32, %c0_i32_0 : i32, i32
  }
  func.func @transform_2(%arg0: i32) -> (i32, i32, i32) {
    %c0_i32 = arith.constant 0 : i32
    %c0_i32_0 = arith.constant 0 : i32
    %c0_i32_1 = arith.constant 0 : i32
    %c0_i32_2 = arith.constant 0 : i32
    return %c0_i32, %c0_i32_0, %c0_i32_1 : i32, i32, i32
  }
  func.func @transform_3(%arg0: i32) -> (i32, i32) {
    %c0_i32 = arith.constant 0 : i32
    %c0_i32_0 = arith.constant 0 : i32
    %c0_i32_1 = arith.constant 0 : i32
    return %c0_i32, %c0_i32_0 : i32, i32
  }
  func.func @transform_4(%arg0: i32) -> (i32, i32) {
    %c0_i32 = arith.constant 0 : i32
    %c0_i32_0 = arith.constant 0 : i32
    %c0_i32_1 = arith.constant 0 : i32
    return %c0_i32, %c0_i32_0 : i32, i32
  }
  func.func @transform_5(%arg0: i32) -> (i32, i32) {
    %c0_i32 = arith.constant 0 : i32
    %c0_i32_0 = arith.constant 0 : i32
    %c0_i32_1 = arith.constant 0 : i32
    return %c0_i32, %c0_i32_0 : i32, i32
  }
  func.func @transform_6(%arg0: i32) -> (i32, i32) {
    %c0_i32 = arith.constant 0 : i32
    %c0_i32_0 = arith.constant 0 : i32
    %c0_i32_1 = arith.constant 0 : i32
    return %c0_i32, %c0_i32_0 : i32, i32
  }
  func.func @transform_7(%arg0: i32) -> (i32, i32) {
    %c0_i32 = arith.constant 0 : i32
    %c0_i32_0 = arith.constant 0 : i32
    %c0_i32_1 = arith.constant 0 : i32
    return %c0_i32, %c0_i32_0 : i32, i32
  }
  func.func @transform_8(%arg0: i32) -> (i32, i32) {
    %c0_i32 = arith.constant 0 : i32
    %c0_i32_0 = arith.constant 0 : i32
    %c0_i32_1 = arith.constant 0 : i32
    return %c0_i32, %c0_i32_0 : i32, i32
  }
  func.func @transform_9(%arg0: i32) -> (i32, i32) {
    %c0_i32 = arith.constant 0 : i32
    %c0_i32_0 = arith.constant 0 : i32
    %c0_i32_1 = arith.constant 0 : i32
    return %c0_i32, %c0_i32_0 : i32, i32
  }
  func.func @transform_10(%arg0: i32) -> (i32, i32) {
    %c0_i32 = arith.constant 0 : i32
    %c0_i32_0 = arith.constant 0 : i32
    %c0_i32_1 = arith.constant 0 : i32
    return %c0_i32, %c0_i32_0 : i32, i32
  }
  func.func @transform_11(%arg0: i32) -> (i32, i32) {
    %c0_i32 = arith.constant 0 : i32
    %c0_i32_0 = arith.constant 0 : i32
    %c0_i32_1 = arith.constant 0 : i32
    return %c0_i32, %c0_i32_0 : i32, i32
  }
  func.func @transform_12(%arg0: i32) -> (i32, i32) {
    %c0_i32 = arith.constant 0 : i32
    %c0_i32_0 = arith.constant 0 : i32
    %c0_i32_1 = arith.constant 0 : i32
    return %c0_i32, %c0_i32_0 : i32, i32
  }
  func.func @transform_13(%arg0: i32) -> (i32, i32) {
    %c0_i32 = arith.constant 0 : i32
    %c0_i32_0 = arith.constant 0 : i32
    %c0_i32_1 = arith.constant 0 : i32
    return %c0_i32, %c0_i32_0 : i32, i32
  }
  func.func @transform_14(%arg0: i32) -> (i32, i32) {
    %c0_i32 = arith.constant 0 : i32
    %c0_i32_0 = arith.constant 0 : i32
    %c0_i32_1 = arith.constant 0 : i32
    return %c0_i32, %c0_i32_0 : i32, i32
  }
  func.func @transform_15(%arg0: i32) -> (i32, i32) {
    %c0_i32 = arith.constant 0 : i32
    %c0_i32_0 = arith.constant 0 : i32
    %c0_i32_1 = arith.constant 0 : i32
    return %c0_i32, %c0_i32_0 : i32, i32
  }
  func.func @transform_16(%arg0: i32) -> (i32, i32) {
    %c0_i32 = arith.constant 0 : i32
    %c0_i32_0 = arith.constant 0 : i32
    %c0_i32_1 = arith.constant 0 : i32
    return %c0_i32, %c0_i32_0 : i32, i32
  }
}

</mosaic_0001>

<bundles_post_ra>
// kernel: bottleneck_residual_block.1
= control target key start
LH: loop header
LB: loop body
LE: loop exit
PB: predicated region body
PF: predicated region fallthrough
CT: control target
= control target key end

     0   :  { %v2540_v62 = vmov 0.0   ;;  %vm187_vm0 = vcmask 130048   ;;  %vm2541_vm1 = vmmov 0   ;;  %vm852_vm2 = vcmask 1043456   ;;  %s3399_s4 = inlined_call_operand.vmem [shape: f32[256,16], index: 4, kind: input, shape index: {}]   ;;  %s3400_s0 = inlined_call_operand.vmem [shape: f32[32,256], index: 0, kind: input, shape index: {}]   ;;  %s3401_s5 = inlined_call_operand.vmem [shape: f32[16,256], index: 5, kind: input, shape index: {}]   ;;  %s3402_s1 = inlined_call_operand.vmem [shape: bf16[256,64], index: 1, kind: input, shape index: {}]   ;;  %s3403_s10 = inlined_call_operand.vmem [shape: f32[1,16], index: 10, kind: input, shape index: {}]   ;;  %s3404_s11 = inlined_call_operand.vmem [shape: f32[1,16], index: 11, kind: input, shape index: {}]   ;;  %s3405_s6 = inlined_call_operand.vmem [shape: f32[64,4], index: 6, kind: input, shape index: {}]   ;;  %s3406_s7 = inlined_call_operand.vmem [shape: f32[4,64], index: 7, kind: input, shape index: {}]   ;;  %s3407_s2 = inlined_call_operand.vmem [shape: bf16[3,64,64], index: 2, kind: input, shape index: {}]   ;;  %s3408_s12 = inlined_call_operand.vmem [shape: f32[1,4], index: 12, kind: input, shape index: {}]   ;;  %s3409_s13 = inlined_call_operand.vmem [shape: f32[1,4], index: 13, kind: input, shape index: {}]   ;;  %s3410_s8 = inlined_call_operand.vmem [shape: f32[32,1], index: 8, kind: input, shape index: {}]   ;;  %s3411_s9 = inlined_call_operand.vmem [shape: f32[32,1], index: 9, kind: input, shape index: {}]   ;;  %s3412_s3 = inlined_call_operand.vmem [shape: bf16[64,256], index: 3, kind: input, shape index: {}]   ;;  %s3413_s14 = inlined_call_operand.vmem [shape: f32[1,4], index: 14, kind: input, shape index: {}]   ;;  %s3414_s15 = inlined_call_operand.vmem [shape: f32[1,4], index: 15, kind: input, shape index: {}]   ;;  %s3415_s16 = inlined_call_operand.vmem [shape: f32[32,256], index: 16, kind: output, shape index: {}]  }
   0x1   :  { %3417 = sst [smem:[#allocation2_spill]] %s3399_s4  ;;  %v2711_v14 = vld [vmem:[%s3400_s0 + $0x8] sm:$0xff]  ;;  %v2722_v16 = vld [vmem:[%s3400_s0 + $0x18] sm:$0xff]  ;;  %v2735_v19 = vld [vmem:[%s3400_s0] sm:$0xff]  ;;  %255 = vmatprep.mubr.f32.mxu1 %v2540_v62  ;;  %vm760_vm3 = vcmask 523264   ;;  %vm848_vm4 = vcmask 31744  }
   0x2   :  { %s3418_s23 = sld [smem:[#allocation2_spill]]  ;;  %v2727_v17 = vld [vmem:[%s3400_s0 + $0x28] sm:$0xff]  ;;  %v107_v18 = vadd.f32 %v2722_v16, %v2711_v14  ;;  %v2740_v20 = vld [vmem:[%s3400_s0 + $0x10] sm:$0xff]  ;;  %v2745_v21 = vld [vmem:[%s3400_s0 + $0x20] sm:$0xff] }
   0x3   :  { %v2756_v23 = vld [vmem:[%s3400_s0 + $0x38] sm:$0xff]  ;;  %v98_v24 = vadd.f32 %v2740_v20, %v2735_v19  ;;  %v2770_v27 = vld [vmem:[%s3400_s0 + $0x30] sm:$0xff]  ;;  %v2874_v60 = vld [vmem:[%s3401_s5 + $0x8] sm:$0xff] }
   0x4   :  { %v108_v26 = vadd.f32 %v107_v18, %v2727_v17  ;;  %v97_v58 = vld [vmem:[%s3401_s5 + $0x18] sm:$0xff]  ;;  %v2868_v59 = vld [vmem:[%s3401_s5 + $0x10] sm:$0xff]  ;;  %v2881_v61 = vld [vmem:[%s3401_s5] sm:$0xff] }
   0x5   :  { %v99_v29 = vadd.f32 %v98_v24, %v2745_v21  ;;  %219 = vmatprep.subr.mxu1 %v97_v58 }
   0x6   :  { %v109_v31 = vadd.f32 %v108_v26, %v2756_v23  ;;  %220 = vmatpush1.msra.mxu1 %v2868_v59 }
   0x7   :  { %v100_v33 = vadd.f32 %v99_v29, %v2770_v27  ;;  %221 = vmatprep.subr.mxu1 %v2874_v60 }
   0x8   :  { %v2631_v0 = vld [vmem:[%s3418_s23 + $0xf8] sm:$0xff]  ;;  %v2641_v2 = vld [vmem:[%s3418_s23 + $0xf0] sm:$0xff]  ;;  %v2653_v4 = vld [vmem:[%s3418_s23 + $0xe8] sm:$0xff]  ;;  %v110_v35 = vrot.slane %v109_v31, 4  ;;  %222 = vmatpush1.msra.mxu1 %v2881_v61 }
   0x9   :  { %v2636_v1 = vld [vmem:[%s3418_s23 + $0x78] sm:$0xff]  ;;  %2175 = vmatprep.subr.mxu0 %v2631_v0  ;;  %v2647_v3 = vld [vmem:[%s3418_s23 + $0x70] sm:$0xff]  ;;  %v2659_v5 = vld [vmem:[%s3418_s23 + $0x68] sm:$0xff]  ;;  %v101_v37 = vrot.slane %v100_v33, 4  ;;  %2210 = vmatprep.subr.mxu1 %v2631_v0  ;;  %v262_v0 = vlaneseq }
   0xa   :  { %2176 = vmatpush3.msra.mxu0 %v2636_v1  ;;  %v2665_v6 = vld [vmem:[%s3418_s23 + $0xe0] sm:$0xff]  ;;  %v2677_v8 = vld [vmem:[%s3418_s23 + $0xd8] sm:$0xff]  ;;  %v2689_v10 = vld [vmem:[%s3418_s23 + $0xd0] sm:$0xff]  ;;  %v111_v39 = vadd.f32 %v110_v35, %v109_v31 }
   0xb   :  { %2177 = vmatprep.subr.mxu0 %v2641_v2  ;;  %v2671_v7 = vld [vmem:[%s3418_s23 + $0x60] sm:$0xff]  ;;  %v2683_v9 = vld [vmem:[%s3418_s23 + $0x58] sm:$0xff]  ;;  %v2695_v11 = vld [vmem:[%s3418_s23 + $0x50] sm:$0xff]  ;;  %v102_v41 = vadd.f32 %v101_v37, %v100_v33 }
   0xc   :  { %2178 = vmatpush3.msra.mxu0 %v2647_v3  ;;  %v2701_v12 = vld [vmem:[%s3418_s23 + $0xc8] sm:$0xff]  ;;  %v2717_v15 = vld [vmem:[%s3418_s23 + $0xc0] sm:$0xff]  ;;  %v2764_v25 = vld [vmem:[%s3418_s23 + $0xb8] sm:$0xff]  ;;  %v112_v43 = vrot.slane %v111_v39, 2 }
   0xd   :  { %2179 = vmatprep.subr.mxu0 %v2653_v4  ;;  %v2706_v13 = vld [vmem:[%s3418_s23 + $0x48] sm:$0xff]  ;;  %v2751_v22 = vld [vmem:[%s3418_s23 + $0x40] sm:$0xff]  ;;  %v2776_v28 = vld [vmem:[%s3418_s23 + $0x38] sm:$0xff]  ;;  %v103_v45 = vrot.slane %v102_v41, 2 }
   0xe   :  { %2180 = vmatpush3.msra.mxu0 %v2659_v5  ;;  %v2783_v30 = vld [vmem:[%s3418_s23 + $0xb0] sm:$0xff]  ;;  %v2797_v34 = vld [vmem:[%s3418_s23 + $0xa8] sm:$0xff]  ;;  %v2809_v38 = vld [vmem:[%s3418_s23 + $0xa0] sm:$0xff]  ;;  %v113_v47 = vadd.f32 %v112_v43, %v111_v39 }
   0xf   :  { %2181 = vmatprep.subr.mxu0 %v2665_v6  ;;  %v2790_v32 = vld [vmem:[%s3418_s23 + $0x30] sm:$0xff]  ;;  %v2803_v36 = vld [vmem:[%s3418_s23 + $0x28] sm:$0xff]  ;;  %v2815_v40 = vld [vmem:[%s3418_s23 + $0x20] sm:$0xff]  ;;  %v104_v49 = vadd.f32 %v103_v45, %v102_v41 }
  0x10   :  { %2182 = vmatpush3.msra.mxu0 %v2671_v7  ;;  %v2821_v42 = vld [vmem:[%s3418_s23 + $0x98] sm:$0xff]  ;;  %v2833_v46 = vld [vmem:[%s3418_s23 + $0x90] sm:$0xff]  ;;  %v2845_v50 = vld [vmem:[%s3418_s23 + $0x88] sm:$0xff]  ;;  %v114_v51 = vrot.slane %v113_v47, 1 }
  0x11   :  { %2183 = vmatprep.subr.mxu0 %v2677_v8  ;;  %v2827_v44 = vld [vmem:[%s3418_s23 + $0x18] sm:$0xff]  ;;  %v2839_v48 = vld [vmem:[%s3418_s23 + $0x10] sm:$0xff]  ;;  %v2851_v52 = vld [vmem:[%s3418_s23 + $0x8] sm:$0xff]  ;;  %v105_v53 = vrot.slane %v104_v49, 1 }
  0x12   :  { %2184 = vmatpush3.msra.mxu0 %v2683_v9  ;;  %v78_v54 = vld [vmem:[%s3418_s23 + $0x80] sm:$0xff]  ;;  %v115_v55 = vadd.f32 %v114_v51, %v113_v47 }
  0x13   :  { %2185 = vmatprep.subr.mxu0 %v2689_v10  ;;  %v62_v56 = vld [vmem:[%s3418_s23] sm:$0xff]  ;;  %v106_v57 = vadd.f32 %v105_v53, %v104_v49  ;;  %v2487_v53 = vld [vmem:[%s3402_s1 + $0x38] sm:$0xff]  }
  0x14   :  { %2186 = vmatpush3.msra.mxu0 %v2695_v11  ;;  %180 = vmatprep.mubr.f32.mxu0 %v115_v55  ;;  %v2489_v55 = vld [vmem:[%s3402_s1 + $0x30] sm:$0xff]  }
  0x15   :  { %2187 = vmatprep.subr.mxu0 %v2701_v12 }
  0x16   :  { %2188 = vmatpush3.msra.mxu0 %v2706_v13 }
  0x17   :  { %2189 = vmatprep.subr.mxu0 %v2717_v15 }
  0x18   :  { %2190 = vmatpush3.msra.mxu0 %v2751_v22 }
  0x19   :  { %2191 = vmatprep.subr.mxu0 %v2764_v25 }
  0x1a   :  { %2192 = vmatpush3.msra.mxu0 %v2776_v28 }
  0x1b   :  { %2193 = vmatprep.subr.mxu0 %v2783_v30 }
  0x1c   :  { %2194 = vmatpush3.msra.mxu0 %v2790_v32 }
  0x1d   :  { %2195 = vmatprep.subr.mxu0 %v2797_v34 }
  0x1e   :  { %2196 = vmatpush3.msra.mxu0 %v2803_v36 }
  0x1f   :  { %2197 = vmatprep.subr.mxu0 %v2809_v38 }
  0x20   :  { %2198 = vmatpush3.msra.mxu0 %v2815_v40 }
  0x21   :  { %2199 = vmatprep.subr.mxu0 %v2821_v42 }
  0x22   :  { %2200 = vmatpush3.msra.mxu0 %v2827_v44 }
  0x23   :  { %2201 = vmatprep.subr.mxu0 %v2833_v46 }
  0x24   :  { %2202 = vmatpush3.msra.mxu0 %v2839_v48 }
  0x25   :  { %2203 = vmatprep.subr.mxu0 %v2845_v50 }
  0x26   :  { %2204 = vmatpush3.msra.mxu0 %v2851_v52 }
  0x27   :  { %2205 = vmatprep.subr.mxu0 %v78_v54 }
  0x28   :  { %2206 = vmatpush3.msra.mxu0 %v62_v56 }
  0x29   :  { %181 = vmatmul.mubr.f32.vlgmr.msra.gmra.mxu0 %v106_v57  ;;  %413 = vmatprep.subr.mxu0 %v97_v58  ;;  %v2491_v57 = vld [vmem:[%s3402_s1 + $0x28] sm:$0xff]  }
  0x2a   :  { %414 = vmatpush1.msra.mxu0 %v2868_v59  ;;  %449 = vmatprep.mubr.f32.mxu0 %v2540_v62 }
  0x2b   :  { %415 = vmatprep.subr.mxu0 %v2874_v60 }
  0x2c   :  { %416 = vmatpush1.msra.mxu0 %v2881_v61 }
  0x2d   :  { %487 = vmatprep.subr.mxu0 %v97_v58  ;;  %v2492_v58 = vld [vmem:[%s3402_s1 + $0x60] sm:$0xff]  }
  0xe9   :  { %v2207_v63 = vpop.f32.mrf.mxu0 }
  0xeb   :  { %v2208_v18 = vpop.f32.mrf.mxu0 }
  0xec   :  { %v2209_v24 = vadd.f32 %v2208_v18, %v2207_v63  ;;  %v2493_v63 = vld [vmem:[%s3402_s1 + $0x20] sm:$0xff]  }
  0xee   :  { %v2889_v26 = vmul.f32 0.001953125, %v2209_v24 }
  0xf0   :  { %2096 = vmatmul.mubr.msk.f32.vlgmr.msra.gmra.mxu1 %vm187_vm0, %v2889_v26 }
  0xf1   :  { %2211 = vmatpush3.msra.mxu1 %v2636_v1  ;;  %v2922_v1 = vshrl.u32 %v262_v0, 7 }
  0xf2   :  { %2212 = vmatprep.subr.mxu1 %v2641_v2 }
  0xf3   :  { %2213 = vmatpush3.msra.mxu1 %v2647_v3  ;;  %v2925_v2 = vsub.s32 0, %v2922_v1  ;;  %vm1461_vm5 = vcmp.lt.s32.totalorder %v2922_v1, 1  ;;  %vm1502_vm6 = vcmp.lt.s32.totalorder %v2922_v1, 7 }
  0xf4   :  { %2214 = vmatprep.subr.mxu1 %v2653_v4 }
  0xf5   :  { %2215 = vmatpush3.msra.mxu1 %v2659_v5 }
  0xf6   :  { %2216 = vmatprep.subr.mxu1 %v2665_v6 }
  0xf7   :  { %2217 = vmatpush3.msra.mxu1 %v2671_v7 }
  0xf8   :  { %2218 = vmatprep.subr.mxu1 %v2677_v8 }
  0xf9   :  { %2219 = vmatpush3.msra.mxu1 %v2683_v9 }
  0xfa   :  { %2220 = vmatprep.subr.mxu1 %v2689_v10 }
  0xfb   :  { %2221 = vmatpush3.msra.mxu1 %v2695_v11 }
  0xfc   :  { %2222 = vmatprep.subr.mxu1 %v2701_v12 }
  0xfd   :  { %2223 = vmatpush3.msra.mxu1 %v2706_v13 }
  0xfe   :  { %2224 = vmatprep.subr.mxu1 %v2717_v15 }
  0xff   :  { %2225 = vmatpush3.msra.mxu1 %v2751_v22 }
 0x100   :  { %2226 = vmatprep.subr.mxu1 %v2764_v25 }
 0x101   :  { %2227 = vmatpush3.msra.mxu1 %v2776_v28 }
 0x102   :  { %2228 = vmatprep.subr.mxu1 %v2783_v30 }
 0x103   :  { %2229 = vmatpush3.msra.mxu1 %v2790_v32 }
 0x104   :  { %2230 = vmatprep.subr.mxu1 %v2797_v34 }
 0x105   :  { %2231 = vmatpush3.msra.mxu1 %v2803_v36 }
 0x106   :  { %2232 = vmatprep.subr.mxu1 %v2809_v38 }
 0x107   :  { %2233 = vmatpush3.msra.mxu1 %v2815_v40 }
 0x108   :  { %2234 = vmatprep.subr.mxu1 %v2821_v42 }
 0x109   :  { %2235 = vmatpush3.msra.mxu1 %v2827_v44 }
 0x10a   :  { %2236 = vmatprep.subr.mxu1 %v2833_v46 }
 0x10b   :  { %2237 = vmatpush3.msra.mxu1 %v2839_v48 }
 0x10c   :  { %2238 = vmatprep.subr.mxu1 %v2845_v50 }
 0x10d   :  { %2239 = vmatpush3.msra.mxu1 %v2851_v52  ;;  %v2486_v52 = vld [vmem:[%s3402_s1 + $0x78] sm:$0xff]  }
 0x10e   :  { %2240 = vmatprep.subr.mxu1 %v78_v54  ;;  %v2488_v54 = vld [vmem:[%s3402_s1 + $0x70] sm:$0xff]  }
 0x10f   :  { %2241 = vmatpush3.msra.mxu1 %v62_v56  ;;  %v2490_v56 = vld [vmem:[%s3402_s1 + $0x68] sm:$0xff]  }
 0x110   :  { %2245 = vmatprep.subr.bf16.mxu1 %v2486_v52 }
 0x1b0   :  { %v257_v3 = vpop.f32.mrf.mxu1 }
 0x1b1   :  { %v265_v4 = vrot.slane %v257_v3, %v2925_v2 }
 0x1b2   :  { %v259_v5 = vpop.f32.mrf.mxu1 }
 0x1b3   :  { %v270_v6 = vsub.f32 %v2735_v19, %v265_v4  ;;  %v272_v7 = vsub.f32 %v2740_v20, %v265_v4  ;;  %v274_v8 = vsub.f32 %v2745_v21, %v265_v4  ;;  %v269_v9 = vrot.slane %v259_v5, %v2925_v2  ;;  %v375_v5 = vld [vmem:[%s3403_s10] sm:$0x1] }
 0x1b4   :  { %v276_v10 = vsub.f32 %v2770_v27, %v265_v4 }
 0x1b5   :  { %v278_v11 = vmul.f32 %v270_v6, %v270_v6  ;;  %v280_v12 = vmul.f32 %v272_v7, %v272_v7  ;;  %v271_v13 = vsub.f32 %v2711_v14, %v269_v9  ;;  %v273_v15 = vsub.f32 %v2722_v16, %v269_v9 }
 0x1b6   :  { %v275_v22 = vsub.f32 %v2727_v17, %v269_v9  ;;  %v282_v25 = vmul.f32 %v274_v8, %v274_v8  ;;  %v277_v29 = vsub.f32 %v2756_v23, %v269_v9  ;;  %v284_v32 = vmul.f32 %v276_v10, %v276_v10  ;;  %v379_v8 = vld [vmem:[%s3404_s11] sm:$0x1] }
 0x1b7   :  { %v286_v28 = vadd.f32 %v280_v12, %v278_v11  ;;  %v279_v30 = vmul.f32 %v271_v13, %v271_v13  ;;  %v281_v31 = vmul.f32 %v273_v15, %v273_v15  ;;  %v2494_v11 = vld [vmem:[%s3402_s1 + $0x58] sm:$0xff]   ;;  %v2499_v12 = vld [vmem:[%s3402_s1 + $0x8] sm:$0xff]   ;;  %v2500_v13 = vld [vmem:[%s3402_s1 + $0x40] sm:$0xff]  }
 0x1b8   :  { %v283_v34 = vmul.f32 %v275_v22, %v275_v22  ;;  %v285_v37 = vmul.f32 %v277_v29, %v277_v29  ;;  %v2501_v15 = vld [vmem:[%s3402_s1] sm:$0xff]  }
 0x1b9   :  { %v287_v33 = vadd.f32 %v286_v28, %v282_v25  ;;  %v295_v35 = vadd.f32 %v281_v31, %v279_v30 }
 0x1bb   :  { %v288_v36 = vadd.f32 %v287_v33, %v284_v32  ;;  %v296_v38 = vadd.f32 %v295_v35, %v283_v34 }
 0x1bd   :  { %v289_v39 = vrot.slane %v288_v36, 4  ;;  %v297_v40 = vadd.f32 %v296_v38, %v285_v37 }
 0x1bf   :  { %v290_v41 = vadd.f32 %v289_v39, %v288_v36  ;;  %v298_v42 = vrot.slane %v297_v40, 4 }
 0x1c1   :  { %v291_v43 = vrot.slane %v290_v41, 2  ;;  %v299_v44 = vadd.f32 %v298_v42, %v297_v40 }
 0x1c3   :  { %v292_v45 = vadd.f32 %v291_v43, %v290_v41  ;;  %v300_v46 = vrot.slane %v299_v44, 2 }
 0x1c5   :  { %v301_v47 = vadd.f32 %v300_v46, %v299_v44  ;;  %v293_v48 = vrot.slane %v292_v45, 1 }
 0x1c7   :  { %v302_v49 = vrot.slane %v301_v47, 1  ;;  %v294_v51 = vadd.f32 %v293_v48, %v292_v45 }
 0x1c9   :  { %v303_v50 = vadd.f32 %v302_v49, %v301_v47 }
 0x1cb   :  { %368 = vmatprep.mubr.f32.mxu1 %v303_v50 }
 0x1cc   :  { %369 = vmatmul.mubr.f32.vlgmr.msra.gmra.mxu1 %v294_v51 }
 0x1cd   :  { %2246 = vmatpush3.bf16.msra.mxu1 %v2487_v53 }
 0x1ce   :  { %2247 = vmatprep.subr.bf16.mxu1 %v2488_v54 }
 0x1d1   :  { %2248 = vmatpush3.bf16.msra.mxu1 %v2489_v55 }
 0x1d2   :  { %2249 = vmatprep.subr.bf16.mxu1 %v2490_v56  ;;  %v3015_v56 = vld [vmem:[%s3405_s6 + $0x38] sm:$0xff] }
 0x1d5   :  { %2250 = vmatpush3.bf16.msra.mxu1 %v2491_v57  ;;  %v3036_v57 = vld [vmem:[%s3405_s6 + $0x20] sm:$0xff] }
 0x1d6   :  { %2251 = vmatprep.subr.bf16.mxu1 %v2492_v58  ;;  %v3043_v58 = vld [vmem:[%s3405_s6 + $0x18] sm:$0xff] }
 0x1d9   :  { %2252 = vmatpush3.bf16.msra.mxu1 %v2493_v63  ;;  %v3050_v63 = vld [vmem:[%s3405_s6 + $0x10] sm:$0xff] }
 0x1da   :  { %2253 = vmatprep.subr.bf16.mxu1 %v2494_v11 }
 0x28c   :  { %v2242_v18 = vpop.f32.mrf.mxu1 }
 0x28e   :  { %v2243_v24 = vpop.f32.mrf.mxu1 }
 0x28f   :  { %v2244_v0 = vadd.f32 %v2243_v24, %v2242_v18  ;;  %v3057_v18 = vld [vmem:[%s3405_s6 + $0x8] sm:$0xff]  ;;  %v3063_v24 = vld [vmem:[%s3405_s6] sm:$0xff] }
 0x291   :  { %v374_v3 = vmul.f32 0.001953125, %v2244_v0  ;;  %v3074_v0 = vld [vmem:[%s3406_s7] sm:$0xf] }
 0x293   :  { %v376_v4 = vadd.f32 1e-05, %v374_v3 }
 0x295   :  { %2526 = vrsqrt.f32 %v376_v4 }
 0x2a2   :  { %v2527_v6 = vpop.eup %2526 }
 0x2a3   :  { %v378_v7 = vmul.f32 %v2527_v6, %v375_v5 }
 0x2a5   :  { %2097 = vmatmul.mubr.msk.f32.vlgmr.msra.gmra.mxu0 %vm187_vm0, %v378_v7  ;;  %v380_v9 = vmul.f32 %v378_v7, %v2889_v26  ;;  %v2495_v26 = vld [vmem:[%s3402_s1 + $0x18] sm:$0xff]  }
 0x2a6   :  { %488 = vmatpush1.msra.mxu0 %v2868_v59  ;;  %523 = vmatprep.mubr.f32.mxu0 %v2540_v62  ;;  %v2496_v59 = vld [vmem:[%s3402_s1 + $0x50] sm:$0xff]  }
 0x2a7   :  { %489 = vmatprep.subr.mxu0 %v2874_v60  ;;  %v381_v10 = vsub.f32 %v379_v8, %v380_v9  ;;  %2254 = vmatpush3.bf16.msra.mxu1 %v2495_v26  ;;  %v2497_v60 = vld [vmem:[%s3402_s1 + $0x10] sm:$0xff]  }
 0x2a8   :  { %490 = vmatpush1.msra.mxu0 %v2881_v61  ;;  %2255 = vmatprep.subr.bf16.mxu1 %v2496_v59  ;;  %v2498_v61 = vld [vmem:[%s3402_s1 + $0x48] sm:$0xff]  }
 0x2a9   :  { %2098 = vmatmul.mubr.msk.f32.vlgmr.msra.gmra.mxu0 %vm187_vm0, %v381_v10  ;;  %2358 = vmatprep.subr.mxu0 %v2540_v62 }
 0x2aa   :  { %2360 = vmatprep.mubr.msk.f32.mxu0 %vm2541_vm1, %v2540_v62  ;;  %2359 = vmatpush3.msk.msra.mxu0 %vm852_vm2, %v3074_v0 }
 0x2ab   :  { %2256 = vmatpush3.bf16.msra.mxu1 %v2497_v60  ;;  %2363 = vmatprep.subr.mxu0 %v2540_v62 }
 0x2ac   :  { %2257 = vmatprep.subr.bf16.mxu1 %v2498_v61 }
 0x2af   :  { %2258 = vmatpush3.bf16.msra.mxu1 %v2499_v12 }
 0x2b0   :  { %2259 = vmatprep.subr.bf16.mxu1 %v2500_v13 }
 0x2b3   :  { %2260 = vmatpush3.bf16.msra.mxu1 %v2501_v15 }
 0x2b4   :  { %2339 = vmatprep.subr.mxu1 %v2540_v62 }
 0x365   :  { %v451_v22 = vpop.f32.mrf.mxu0 }
 0x366   :  { %v533_v25 = vrot.slane %v451_v22, %v2925_v2 }
 0x367   :  { %v453_v28 = vpop.f32.mrf.mxu0 }
 0x368   :  { %v537_v29 = vrot.slane %v453_v28, %v2925_v2  ;;  %v538_v31 = vmul.f32 %v533_v25, %v2735_v19  ;;  %v540_v32 = vmul.f32 %v533_v25, %v2740_v20  ;;  %v542_v49 = vmul.f32 %v533_v25, %v2745_v21  ;;  %v3022_v21 = vld [vmem:[%s3405_s6 + $0x30] sm:$0xff] }
 0x369   :  { %v525_v30 = vpop.f32.mrf.mxu0  ;;  %v544_v50 = vmul.f32 %v533_v25, %v2770_v27  ;;  %v3029_v27 = vld [vmem:[%s3405_s6 + $0x28] sm:$0xff] }
 0x36a   :  { %v549_v33 = vrot.slane %v525_v30, %v2925_v2  ;;  %v539_v35 = vmul.f32 %v537_v29, %v2711_v14  ;;  %v541_v39 = vmul.f32 %v537_v29, %v2722_v16  ;;  %v543_v40 = vmul.f32 %v537_v29, %v2727_v17 }
 0x36b   :  { %v527_v34 = vpop.f32.mrf.mxu0  ;;  %v545_v41 = vmul.f32 %v537_v29, %v2756_v23 }
 0x36c   :  { %v554_v36 = vadd.f32 %v549_v33, %v538_v31  ;;  %v556_v37 = vadd.f32 %v549_v33, %v540_v32  ;;  %v553_v38 = vrot.slane %v527_v34, %v2925_v2  ;;  %v558_v52 = vadd.f32 %v549_v33, %v542_v49 }
 0x36d   :  { %v560_v17 = vadd.f32 %v549_v33, %v544_v50 }
 0x36e   :  { %v555_v42 = vadd.f32 %v553_v38, %v539_v35  ;;  %v557_v43 = vadd.f32 %v553_v38, %v541_v39  ;;  %v562_v19 = vmax.f32 %v554_v36, 0.0  ;;  %v564_v44 = vmax.f32 %v556_v37, 0.0 }
 0x36f   :  { %v559_v20 = vadd.f32 %v553_v38, %v543_v40  ;;  %v561_v45 = vadd.f32 %v553_v38, %v545_v41  ;;  %v566_v53 = vmax.f32 %v558_v52, 0.0  ;;  %v568_v54 = vmax.f32 %v560_v17, 0.0 }
 0x370   :  { %v563_v46 = vmax.f32 %v555_v42, 0.0  ;;  %v565_v47 = vmax.f32 %v557_v43, 0.0  ;;  %v570_v16 = vpack.c.bf16 %v564_v44, %v562_v19 }
 0x371   :  { %v567_v48 = vmax.f32 %v559_v20, 0.0  ;;  %v569_v14 = vmax.f32 %v561_v45, 0.0  ;;  %v572_v55 = vpack.c.bf16 %v568_v54, %v566_v53 }
 0x372   :  { %v571_v51 = vpack.c.bf16 %v565_v47, %v563_v46 }
 0x373   :  { %v573_v23 = vpack.c.bf16 %v569_v14, %v567_v48 }
 0x374   :  { %734 = vmatprep.mubr.bf16.mxu1 %v571_v51 }
 0x375   :  { %735 = vmatmul.mubr.bf16.vlgmr.msra.gmra.mxu1 %v570_v16 }
 0x376   :  { %742 = vmatprep.mubr.bf16.mxu1 %v573_v23  ;;  %2340 = vmatpush3.msra.mxu1 %v3015_v56 }
 0x377   :  { %2341 = vmatprep.subr.mxu1 %v2540_v62 }
 0x378   :  { %2342 = vmatpush3.msra.mxu1 %v3022_v21 }
 0x379   :  { %2343 = vmatprep.subr.mxu1 %v2540_v62 }
 0x37a   :  { %2344 = vmatpush3.msra.mxu1 %v3029_v27 }
 0x37b   :  { %2345 = vmatprep.subr.mxu1 %v2540_v62 }
 0x37c   :  { %2346 = vmatpush3.msra.mxu1 %v3036_v57 }
 0x37d   :  { %743 = vmatmul.mubr.bf16.gmra.mxu1 %v572_v55  ;;  %2347 = vmatprep.subr.mxu1 %v2540_v62 }
 0x37e   :  { %2348 = vmatpush3.msra.mxu1 %v3043_v58  ;;  %2355 = vmatprep.mubr.msk.f32.mxu1 %vm2541_vm1, %v2540_v62 }
 0x37f   :  { %2349 = vmatprep.subr.mxu1 %v2540_v62 }
 0x380   :  { %2350 = vmatpush3.msra.mxu1 %v3050_v63 }
 0x381   :  { %2351 = vmatprep.subr.mxu1 %v2540_v62 }
 0x382   :  { %2352 = vmatpush3.msra.mxu1 %v3057_v18 }
 0x383   :  { %2353 = vmatprep.subr.mxu1 %v2540_v62 }
 0x384   :  { %2354 = vmatpush3.msra.mxu1 %v3063_v24 }
 0x435   :  { %v2261_v3 = vpop.f32.mrf.mxu1 }
 0x437   :  { %v2262_v4 = vpop.f32.mrf.mxu1 }
 0x438   :  { %v3081_v9 = vadd.f32 %v2262_v4, %v2261_v3  ;;  %v2502_v3 = vld [vmem:[%s3407_s2 + $0x18] sm:$0xff]  }
 0x439   :  { %v2264_v5 = vpop.f32.mrf.mxu1  ;;  %2392 = vmatprep.subr.bf16.mxu1 %v2502_v3 }
 0x43a   :  { %v761_v60 = vsel %vm760_vm3, %v3081_v9, 0.0 }
 0x43b   :  { %v2265_v6 = vpop.f32.mrf.mxu1 }
 0x43c   :  { %v3079_v7 = vadd.f32 %v2265_v6, %v2264_v5 }
 0x43d   :  { %v2267_v8 = vpop.f32.mrf.mxu1 }
 0x43e   :  { %v762_v11 = vsel %vm760_vm3, %v3079_v7, 0.0 }
 0x43f   :  { %v2268_v10 = vpop.f32.mrf.mxu1  ;;  %v763_v12 = vadd.f32 %v762_v11, %v761_v60  ;;  %v2503_v60 = vld [vmem:[%s3407_s2 + $0x38] sm:$0xff]  }
 0x440   :  { %v3085_v26 = vadd.f32 %v2268_v10, %v2267_v8  ;;  %v1025_v10 = vld [vmem:[%s3408_s12] sm:$0x1] }
 0x441   :  { %v2270_v59 = vpop.f32.mrf.mxu1 }
 0x442   :  { %v764_v61 = vsel %vm760_vm3, %v3085_v26, 0.0 }
 0x443   :  { %v2271_v13 = vpop.f32.mrf.mxu1  ;;  %v765_v22 = vadd.f32 %v764_v61, %v763_v12  ;;  %v1029_v61 = vld [vmem:[%s3409_s13] sm:$0x1] }
 0x444   :  { %v3091_v15 = vadd.f32 %v2271_v13, %v2270_v59 }
 0x446   :  { %v766_v25 = vsel %vm760_vm3, %v3091_v15, 0.0 }
 0x447   :  { %v767_v28 = vadd.f32 %v766_v25, %v765_v22  ;;  %v2504_v22 = vld [vmem:[%s3407_s2 + $0x10] sm:$0xff]  }
 0x448   :  { %v2505_v25 = vld [vmem:[%s3407_s2 + $0x30] sm:$0xff]  }
 0x449   :  { %v768_v29 = vrot.slane %v767_v28, 4 }
 0x44b   :  { %v769_v30 = vadd.f32 %v768_v29, %v767_v28  ;;  %v2506_v28 = vld [vmem:[%s3407_s2 + $0x8] sm:$0xff]  }
 0x44c   :  { %v2507_v29 = vld [vmem:[%s3407_s2 + $0x28] sm:$0xff]  }
 0x44d   :  { %v770_v31 = vrot.slane %v769_v30, 2 }
 0x44f   :  { %v771_v32 = vadd.f32 %v770_v31, %v769_v30  ;;  %v2508_v30 = vld [vmem:[%s3407_s2] sm:$0xff]  }
 0x450   :  { %v2509_v31 = vld [vmem:[%s3407_s2 + $0x20] sm:$0xff]  }
 0x451   :  { %v772_v33 = vrot.slane %v771_v32, 1 }
 0x453   :  { %v773_v34 = vadd.f32 %v772_v33, %v771_v32  ;;  %v2510_v32 = vld [vmem:[%s3407_s2 + $0x58] sm:$0xff]   ;;  %v2542_v33 = vmov 0  }
 0x454   :  { %2485 = vset.pattern.permute.xlu1 %v2542_v33  ;;  %2484 = vset.pattern.permute.xlu0 %v2542_v33 }
 0x455   :  { %2356 = vmatmul.mubr.msk.f32.vlgmr.msra.gmra.mxu1 %vm760_vm3, %v773_v34  ;;  %v1453_v34 = vld [vmem:[%s3410_s8 + $0x10] sm:$0xff] }
 0x456   :  { %2393 = vmatpush3.bf16.msra.mxu1 %v2502_v3  ;;  %1478 = vperm.xlu1 %2485, %v1453_v34  }
 0x457   :  { %2394 = vmatprep.subr.bf16.mxu1 %v2504_v22 }
 0x45a   :  { %2395 = vmatpush3.bf16.msra.mxu1 %v2504_v22 }
 0x45b   :  { %2396 = vmatprep.subr.bf16.mxu1 %v2506_v28 }
 0x45e   :  { %2397 = vmatpush3.bf16.msra.mxu1 %v2506_v28 }
 0x45f   :  { %2398 = vmatprep.subr.bf16.mxu1 %v2508_v30 }
 0x462   :  { %2399 = vmatpush3.bf16.msra.mxu1 %v2508_v30 }
 0x463   :  { %2416 = vmatprep.subr.bf16.mxu1 %v2510_v32 }
 0x515   :  { %v843_v35 = vpop.f32.mrf.mxu1 }
 0x516   :  { %v3096_v36 = vmul.f32 0.001953125, %v843_v35  ;;  %v1451_v35 = vld [vmem:[%s3410_s8] sm:$0xff] }
 0x517   :  { %v2357_v37 = vpop.f32.mrf.mxu1  ;;  %1468 = vperm.xlu0 %2484, %v1451_v35  }
 0x518   :  { %2361 = vmatmul.mubr.msk.f32.vlgmr.msra.gmra.mxu0 %vm848_vm4, %v3096_v36  ;;  %v1452_v37 = vld [vmem:[%s3410_s8 + $0x8] sm:$0xff] }
 0x519   :  { %2364 = vmatpush3.msra.mxu0 %v3015_v56  ;;  %2379 = vmatprep.mubr.msk.f32.mxu0 %vm2541_vm1, %v2540_v62 }
 0x51a   :  { %2365 = vmatprep.subr.mxu0 %v2540_v62 }
 0x51b   :  { %2366 = vmatpush3.msra.mxu0 %v3022_v21  ;;  %1473 = vperm.xlu0 %2484, %v1452_v37  }
 0x51c   :  { %2367 = vmatprep.subr.mxu0 %v2540_v62 }
 0x51d   :  { %2368 = vmatpush3.msra.mxu0 %v3029_v27 }
 0x51e   :  { %2369 = vmatprep.subr.mxu0 %v2540_v62 }
 0x51f   :  { %2370 = vmatpush3.msra.mxu0 %v3036_v57 }
 0x520   :  { %2371 = vmatprep.subr.mxu0 %v2540_v62 }
 0x521   :  { %2372 = vmatpush3.msra.mxu0 %v3043_v58 }
 0x522   :  { %2373 = vmatprep.subr.mxu0 %v2540_v62 }
 0x523   :  { %2374 = vmatpush3.msra.mxu0 %v3050_v63 }
 0x524   :  { %2375 = vmatprep.subr.mxu0 %v2540_v62 }
 0x525   :  { %2376 = vmatpush3.msra.mxu0 %v3057_v18 }
 0x526   :  { %2377 = vmatprep.subr.mxu0 %v2540_v62 }
 0x527   :  { %2378 = vmatpush3.msra.mxu0 %v3063_v24 }
 0x528   :  { %2382 = vmatprep.subr.mxu0 %v2540_v62 }
 0x5d8   :  { %v922_v38 = vpop.f32.mrf.mxu0 }
 0x5d9   :  { %v929_v39 = vrot.slane %v922_v38, %v2925_v2  ;;  %v1454_v38 = vld [vmem:[%s3410_s8 + $0x18] sm:$0xff] }
 0x5da   :  { %v2362_v40 = vpop.f32.mrf.mxu0 }
 0x5db   :  { %v930_v41 = vsub.f32 %v3081_v9, %v929_v39  ;;  %v931_v42 = vsub.f32 %v3079_v7, %v929_v39  ;;  %v932_v43 = vsub.f32 %v3085_v26, %v929_v39  ;;  %v933_v19 = vsub.f32 %v3091_v15, %v929_v39  ;;  %v1495_v39 = vld [vmem:[%s3411_s9 + $0x8] sm:$0xff]  ;;  %v1496_v40 = vld [vmem:[%s3411_s9 + $0x10] sm:$0xff] }
 0x5dc   :  { %1514 = vperm.xlu0 %2484, %v1495_v39  }
 0x5dd   :  { %v934_v44 = vmul.f32 %v930_v41, %v930_v41  ;;  %v935_v20 = vmul.f32 %v931_v42, %v931_v42  ;;  %v936_v45 = vmul.f32 %v932_v43, %v932_v43  ;;  %v937_v46 = vmul.f32 %v933_v19, %v933_v19  ;;  %v1497_v41 = vld [vmem:[%s3411_s9 + $0x18] sm:$0xff] }
 0x5df   :  { %v938_v47 = vsel %vm760_vm3, %v934_v44, 0.0  ;;  %v939_v48 = vsel %vm760_vm3, %v935_v20, 0.0  ;;  %v941_v49 = vsel %vm760_vm3, %v936_v45, 0.0  ;;  %v943_v51 = vsel %vm760_vm3, %v937_v46, 0.0 }
 0x5e0   :  { %v940_v14 = vadd.f32 %v939_v48, %v938_v47  ;;  %1519 = vperm.xlu0 %2484, %v1496_v40  }
 0x5e2   :  { %v942_v50 = vadd.f32 %v941_v49, %v940_v14 }
 0x5e4   :  { %v944_v16 = vadd.f32 %v943_v51, %v942_v50 }
 0x5e6   :  { %v945_v52 = vrot.slane %v944_v16, 4 }
 0x5e8   :  { %v946_v17 = vadd.f32 %v945_v52, %v944_v16 }
 0x5ea   :  { %v947_v23 = vrot.slane %v946_v17, 2 }
 0x5ec   :  { %v948_v53 = vadd.f32 %v947_v23, %v946_v17 }
 0x5ee   :  { %v949_v54 = vrot.slane %v948_v53, 1 }
 0x5f0   :  { %v950_v55 = vadd.f32 %v949_v54, %v948_v53 }
 0x5f2   :  { %2380 = vmatmul.mubr.msk.f32.vlgmr.msra.gmra.mxu0 %vm760_vm3, %v950_v55 }
 0x5f3   :  { %2383 = vmatpush3.msk.msra.mxu0 %vm852_vm2, %v3074_v0  ;;  %2384 = vmatprep.mubr.msk.f32.mxu0 %vm2541_vm1, %v2540_v62 }
 0x5f4   :  { %2387 = vmatprep.subr.mxu0 %v2540_v62 }
 0x6b2   :  { %v1020_v4 = vpop.f32.mrf.mxu0 }
 0x6b3   :  { %v1024_v5 = vmul.f32 0.001953125, %v1020_v4  ;;  %v1469_v4 = vpop.permute.xlu0 %1468 }
 0x6b4   :  { %v2381_v6 = vpop.f32.mrf.mxu0 }
 0x6b5   :  { %v1026_v8 = vadd.f32 1e-05, %v1024_v5  ;;  %v1479_v6 = vpop.permute.xlu1 %1478 }
 0x6b7   :  { %2528 = vrsqrt.f32 %v1026_v8  ;;  %v1474_v8 = vpop.permute.xlu0 %1473 }
 0x6c4   :  { %v2529_v11 = vpop.eup %2528 }
 0x6c5   :  { %v1028_v59 = vmul.f32 %v2529_v11, %v1025_v10 }
 0x6c7   :  { %2385 = vmatmul.mubr.msk.f32.vlgmr.msra.gmra.mxu0 %vm848_vm4, %v1028_v59  ;;  %v1030_v12 = vmul.f32 %v1028_v59, %v3096_v36  ;;  %v1494_v36 = vld [vmem:[%s3411_s9] sm:$0xff] }
 0x6c8   :  { %2388 = vmatpush3.msk.msra.mxu0 %vm852_vm2, %v3074_v0  ;;  %2389 = vmatprep.mubr.msk.f32.mxu0 %vm2541_vm1, %v2540_v62 }
 0x6c9   :  { %v1031_v13 = vsub.f32 %v1029_v61, %v1030_v12  ;;  %2404 = vmatprep.subr.bf16.mxu0 %v2503_v60  ;;  %1509 = vperm.xlu1 %2485, %v1494_v36  }
 0x6cb   :  { %2390 = vmatmul.mubr.msk.f32.vlgmr.msra.gmra.mxu0 %vm848_vm4, %v1031_v13 }
 0x6cc   :  { %2405 = vmatpush3.bf16.msra.mxu0 %v2503_v60 }
 0x6cd   :  { %2406 = vmatprep.subr.bf16.mxu0 %v2505_v25  ;;  %1483 = vperm.xlu1 %2485, %v1454_v38  }
 0x6d0   :  { %2407 = vmatpush3.bf16.msra.mxu0 %v2505_v25 }
 0x6d1   :  { %2408 = vmatprep.subr.bf16.mxu0 %v2507_v29  ;;  %1524 = vperm.xlu1 %2485, %v1497_v41  }
 0x6d4   :  { %2409 = vmatpush3.bf16.msra.mxu0 %v2507_v29  ;;  %v1515_v29 = vpop.permute.xlu0 %1514 }
 0x6d5   :  { %2410 = vmatprep.subr.bf16.mxu0 %v2509_v31 }
 0x6d8   :  { %2411 = vmatpush3.bf16.msra.mxu0 %v2509_v31 }
 0x6d9   :  { %2428 = vmatprep.subr.mxu0 %v2540_v62 }
 0x744   :  { %v1510_v12 = vpop.permute.xlu1 %1509 }
 0x748   :  { %v1484_v39 = vpop.permute.xlu1 %1483 }
 0x787   :  { %v1101_v42 = vpop.f32.mrf.mxu0 }
 0x788   :  { %v1181_v43 = vrot.slane %v1101_v42, %v2925_v2 }
 0x789   :  { %v2386_v19 = vpop.f32.mrf.mxu0 }
 0x78a   :  { %v1182_v44 = vmul.f32 %v3081_v9, %v1181_v43  ;;  %v1183_v45 = vmul.f32 %v3079_v7, %v1181_v43  ;;  %v1184_v46 = vmul.f32 %v3085_v26, %v1181_v43  ;;  %v1185_v47 = vmul.f32 %v3091_v15, %v1181_v43  ;;  %v2511_v7 = vld [vmem:[%s3407_s2 + $0x50] sm:$0xff]   ;;  %v2512_v26 = vld [vmem:[%s3407_s2 + $0x48] sm:$0xff]   ;;  %v2513_v15 = vld [vmem:[%s3407_s2 + $0x40] sm:$0xff]  }
 0x78b   :  { %v1174_v20 = vpop.f32.mrf.mxu0 }
 0x78c   :  { %v1189_v48 = vrot.slane %v1174_v20, %v2925_v2 }
 0x78d   :  { %v2391_v14 = vpop.f32.mrf.mxu0 }
 0x78e   :  { %v1190_v49 = vadd.f32 %v1189_v48, %v1182_v44  ;;  %v1191_v50 = vadd.f32 %v1189_v48, %v1183_v45  ;;  %v1192_v51 = vadd.f32 %v1189_v48, %v1184_v46  ;;  %v1193_v16 = vadd.f32 %v1189_v48, %v1185_v47  ;;  %v1520_v44 = vpop.permute.xlu0 %1519 }
 0x790   :  { %v1194_v52 = vmax.f32 %v1190_v49, 0.0  ;;  %v1195_v17 = vmax.f32 %v1191_v50, 0.0  ;;  %v1196_v23 = vmax.f32 %v1192_v51, 0.0  ;;  %v1197_v53 = vmax.f32 %v1193_v16, 0.0  ;;  %v1525_v51 = vpop.permute.xlu1 %1524 }
 0x792   :  { %v1199_v54 = vpack.c.bf16 %v1197_v53, %v1196_v23  ;;  %v1198_v9 = vpack.c.bf16 %v1195_v17, %v1194_v52 }
 0x794   :  { %2400 = vmatprep.mubr.msk.bf16.mxu1 %vm760_vm3, %v1198_v9  ;;  %2412 = vmatprep.mubr.msk.bf16.mxu0 %vm760_vm3, %v1198_v9 }
 0x795   :  { %2401 = vmatmul.mubr.msk.bf16.vlgmr.msra.gmra.mxu1 %vm760_vm3, %v1199_v54  ;;  %2413 = vmatmul.mubr.msk.bf16.vlgmr.msra.gmra.mxu0 %vm760_vm3, %v1199_v54 }
 0x796   :  { %2417 = vmatpush3.bf16.msra.mxu1 %v2510_v32  ;;  %2424 = vmatprep.mubr.msk.bf16.mxu1 %vm760_vm3, %v1198_v9 }
 0x797   :  { %2418 = vmatprep.subr.bf16.mxu1 %v2511_v7  ;;  %2429 = vmatpush3.msra.mxu0 %v3015_v56 }
 0x798   :  { %2430 = vmatprep.subr.mxu0 %v2540_v62  ;;  %2444 = vmatprep.mubr.msk.f32.mxu0 %vm2541_vm1, %v2540_v62 }
 0x799   :  { %2431 = vmatpush3.msra.mxu0 %v3022_v21 }
 0x79a   :  { %2419 = vmatpush3.bf16.msra.mxu1 %v2511_v7  ;;  %2432 = vmatprep.subr.mxu0 %v2540_v62 }
 0x79b   :  { %2420 = vmatprep.subr.bf16.mxu1 %v2512_v26  ;;  %2433 = vmatpush3.msra.mxu0 %v3029_v27 }
 0x79c   :  { %2434 = vmatprep.subr.mxu0 %v2540_v62 }
 0x79d   :  { %2435 = vmatpush3.msra.mxu0 %v3036_v57 }
 0x79e   :  { %2421 = vmatpush3.bf16.msra.mxu1 %v2512_v26  ;;  %2436 = vmatprep.subr.mxu0 %v2540_v62 }
 0x79f   :  { %2422 = vmatprep.subr.bf16.mxu1 %v2513_v15  ;;  %2437 = vmatpush3.msra.mxu0 %v3043_v58 }
 0x7a0   :  { %2438 = vmatprep.subr.mxu0 %v2540_v62 }
 0x7a1   :  { %2439 = vmatpush3.msra.mxu0 %v3050_v63 }
 0x7a2   :  { %2423 = vmatpush3.bf16.msra.mxu1 %v2513_v15  ;;  %2440 = vmatprep.subr.mxu0 %v2540_v62 }
 0x7a3   :  { %2441 = vmatpush3.msra.mxu0 %v3057_v18  ;;  %2447 = vmatprep.subr.mxu1 %v2540_v62 }
 0x7a4   :  { %2442 = vmatprep.subr.mxu0 %v2540_v62 }
 0x7a5   :  { %2425 = vmatmul.mubr.msk.bf16.vlgmr.msra.gmra.mxu1 %vm760_vm3, %v1199_v54  ;;  %2443 = vmatpush3.msra.mxu0 %v3063_v24 }
 0x7a6   :  { %2448 = vmatpush3.msk.msra.mxu1 %vm852_vm2, %v3074_v0  ;;  %2449 = vmatprep.mubr.msk.f32.mxu1 %vm2541_vm1, %v2540_v62 }
 0x7a7   :  { %2452 = vmatprep.subr.mxu1 %v2540_v62  ;;  %2471 = vmatprep.subr.mxu0 %v2540_v62 }
 0x855   :  { %v2402_v55 = vpop.f32.mrf.mxu1  ;;  %v2414_v11 = vpop.f32.mrf.mxu0 }
 0x856   :  { %v1457_v13 = vrot.slane %v2402_v55, 7 }
 0x857   :  { %v1272_v3 = vpop.f32.mrf.mxu1  ;;  %v1354_v25 = vpop.f32.mrf.mxu0 }
 0x858   :  { %v1455_v61 = vrot.slane %v1272_v3, 7 }
 0x859   :  { %v2403_v5 = vpop.f32.mrf.mxu1  ;;  %v2415_v37 = vpop.f32.mrf.mxu0 }
 0x85a   :  { %v1458_v59 = vrot.slane %v2403_v5, 7 }
 0x85b   :  { %v1275_v10 = vpop.f32.mrf.mxu1  ;;  %v1357_v50 = vpop.f32.mrf.mxu0 }
 0x85c   :  { %v1456_v60 = vrot.slane %v1275_v10, 7  ;;  %v1465_v28 = vsel %vm1461_vm5, %v1458_v59, %v1455_v61  ;;  %v1462_v35 = vsel %vm1461_vm5, %v1457_v13, %v1458_v59 }
 0x85d   :  { %v1486_v34 = vmul.f32 %v1469_v4, %v1465_v28  ;;  %v1489_v47 = vmul.f32 %v1484_v39, %v1462_v35 }
 0x85e   :  { %v1463_v30 = vsel %vm1461_vm5, %v1456_v60, %v1457_v13  ;;  %v1464_v32 = vsel %vm1461_vm5, %v1455_v61, %v1456_v60 }
 0x85f   :  { %v1488_v38 = vmul.f32 %v1479_v6, %v1463_v30  ;;  %v1487_v43 = vmul.f32 %v1474_v8, %v1464_v32  ;;  %v1490_v14 = vadd.f32 %v1486_v34, %v1354_v25  ;;  %v1493_v9 = vadd.f32 %v2415_v37, %v1489_v47 }
 0x861   :  { %v1492_v49 = vadd.f32 %v2414_v11, %v1488_v38  ;;  %v1491_v17 = vadd.f32 %v1487_v43, %v1357_v50  ;;  %v2516_v50 = vld [vmem:[%s3412_s3 + $0x34] ss:$8 sps:$4 sm:$0xff]  }
 0x865   :  { %v2426_v22 = vpop.f32.mrf.mxu1 }
 0x866   :  { %v1500_v40 = vrot.slane %v2426_v22, 1 }
 0x867   :  { %v1436_v31 = vpop.f32.mrf.mxu1 }
 0x868   :  { %v1498_v41 = vrot.slane %v1436_v31, 1 }
 0x869   :  { %v2427_v36 = vpop.f32.mrf.mxu1 }
 0x86a   :  { %v1501_v42 = vrot.slane %v2427_v36, 1 }
 0x86b   :  { %v1439_v19 = vpop.f32.mrf.mxu1 }
 0x86c   :  { %v1503_v20 = vsel %vm1502_vm6, %v1500_v40, %v1501_v42  ;;  %v1506_v45 = vsel %vm1502_vm6, %v1501_v42, %v1498_v41  ;;  %v1499_v46 = vrot.slane %v1439_v19, 1 }
 0x86d   :  { %v1529_v48 = vmul.f32 %v1520_v44, %v1503_v20  ;;  %v1530_v23 = vmul.f32 %v1525_v51, %v1506_v45  ;;  %v1798_v51 = vld [vmem:[%s3414_s15] sm:$0x1] }
 0x86e   :  { %v1504_v16 = vsel %vm1502_vm6, %v1499_v46, %v1500_v40  ;;  %v1505_v52 = vsel %vm1502_vm6, %v1498_v41, %v1499_v46 }
 0x86f   :  { %v1527_v53 = vmul.f32 %v1510_v12, %v1505_v52  ;;  %v1528_v54 = vmul.f32 %v1515_v29, %v1504_v16  ;;  %v3255_v7 = vadd.f32 %v1529_v48, %v1492_v49  ;;  %v3261_v55 = vadd.f32 %v1530_v23, %v1493_v9  ;;  %v1794_v48 = vld [vmem:[%s3413_s14] sm:$0x1]  ;;  %v2514_v52 = vld [vmem:[%s3412_s3 + $0x30] ss:$8 sps:$4 sm:$0xff]   ;;  %v2519_v23 = vld [vmem:[%s3412_s3 + $0x24] ss:$8 sps:$4 sm:$0xff]  }
 0x870   :  { %v2523_v9 = vld [vmem:[%s3412_s3] ss:$8 sps:$4 sm:$0xff]  }
 0x871   :  { %v3257_v26 = vadd.f32 %v1527_v53, %v1490_v14  ;;  %v3259_v15 = vadd.f32 %v1528_v54, %v1491_v17  ;;  %v1538_v5 = vsel %vm760_vm3, %v3255_v7, 0.0  ;;  %v1540_v8 = vsel %vm760_vm3, %v3261_v55, 0.0  ;;  %v2520_v53 = vld [vmem:[%s3412_s3 + $0x10] ss:$8 sps:$4 sm:$0xff]   ;;  %v2525_v54 = vld [vmem:[%s3412_s3 + $0x4] ss:$8 sps:$4 sm:$0xff]  }
 0x873   :  { %v1535_v3 = vsel %vm760_vm3, %v3257_v26, 0.0  ;;  %v1536_v1 = vsel %vm760_vm3, %v3259_v15, 0.0 }
 0x874   :  { %v1537_v4 = vadd.f32 %v1536_v1, %v1535_v3 }
 0x876   :  { %v1539_v6 = vadd.f32 %v1538_v5, %v1537_v4 }
 0x878   :  { %v1541_v10 = vadd.f32 %v1540_v8, %v1539_v6 }
 0x87a   :  { %v1542_v11 = vrot.slane %v1541_v10, 4 }
 0x87c   :  { %v1543_v59 = vadd.f32 %v1542_v11, %v1541_v10 }
 0x87e   :  { %v1544_v60 = vrot.slane %v1543_v59, 2 }
 0x880   :  { %v1545_v61 = vadd.f32 %v1544_v60, %v1543_v59 }
 0x882   :  { %v1546_v12 = vrot.slane %v1545_v61, 1 }
 0x884   :  { %v1547_v13 = vadd.f32 %v1546_v12, %v1545_v61 }
 0x886   :  { %2445 = vmatmul.mubr.msk.f32.vlgmr.msra.gmra.mxu0 %vm760_vm3, %v1547_v13 }
 0x887   :  { %2472 = vmatpush3.msk.msra.mxu0 %vm852_vm2, %v3074_v0  ;;  %2473 = vmatprep.mubr.msk.f32.mxu0 %vm2541_vm1, %v2540_v62 }
 0x888   :  { %2476 = vmatprep.subr.mxu0 %v2540_v62 }
 0x946   :  { %v1617_v22 = vpop.f32.mrf.mxu0 }
 0x947   :  { %v1621_v25 = vmul.f32 0.001953125, %v1617_v22 }
 0x948   :  { %v2446_v28 = vpop.f32.mrf.mxu0 }
 0x949   :  { %2450 = vmatmul.mubr.msk.f32.vlgmr.msra.gmra.mxu1 %vm848_vm4, %v1621_v25 }
 0x94a   :  { %2453 = vmatpush3.msra.mxu1 %v3015_v56  ;;  %2468 = vmatprep.mubr.msk.f32.mxu1 %vm2541_vm1, %v2540_v62 }
 0x94b   :  { %2454 = vmatprep.subr.mxu1 %v2540_v62 }
 0x94c   :  { %2455 = vmatpush3.msra.mxu1 %v3022_v21 }
 0x94d   :  { %2456 = vmatprep.subr.mxu1 %v2540_v62 }
 0x94e   :  { %2457 = vmatpush3.msra.mxu1 %v3029_v27 }
 0x94f   :  { %2458 = vmatprep.subr.mxu1 %v2540_v62 }
 0x950   :  { %2459 = vmatpush3.msra.mxu1 %v3036_v57 }
 0x951   :  { %2460 = vmatprep.subr.mxu1 %v2540_v62 }
 0x952   :  { %2461 = vmatpush3.msra.mxu1 %v3043_v58 }
 0x953   :  { %2462 = vmatprep.subr.mxu1 %v2540_v62 }
 0x954   :  { %2463 = vmatpush3.msra.mxu1 %v3050_v63 }
 0x955   :  { %2464 = vmatprep.subr.mxu1 %v2540_v62 }
 0x956   :  { %2465 = vmatpush3.msra.mxu1 %v3057_v18 }
 0x957   :  { %2466 = vmatprep.subr.mxu1 %v2540_v62 }
 0x958   :  { %2467 = vmatpush3.msra.mxu1 %v3063_v24 }
 0xa09   :  { %v1691_v56 = vpop.f32.mrf.mxu1 }
 0xa0a   :  { %v1698_v21 = vrot.slane %v1691_v56, %v2925_v2 }
 0xa0b   :  { %v2451_v27 = vpop.f32.mrf.mxu1 }
 0xa0c   :  { %v1699_v57 = vsub.f32 %v3257_v26, %v1698_v21  ;;  %v1700_v58 = vsub.f32 %v3259_v15, %v1698_v21  ;;  %v1701_v29 = vsub.f32 %v3255_v7, %v1698_v21  ;;  %v1702_v63 = vsub.f32 %v3261_v55, %v1698_v21 }
 0xa0e   :  { %v1703_v30 = vmul.f32 %v1699_v57, %v1699_v57  ;;  %v1704_v31 = vmul.f32 %v1700_v58, %v1700_v58  ;;  %v1705_v32 = vmul.f32 %v1701_v29, %v1701_v29  ;;  %v1706_v18 = vmul.f32 %v1702_v63, %v1702_v63  ;;  %v2534_v29 = vld [vmem:[%s3400_s0 + $0x10] sm:$0xff] }
 0xa10   :  { %v1707_v34 = vsel %vm760_vm3, %v1703_v30, 0.0  ;;  %v1708_v24 = vsel %vm760_vm3, %v1704_v31, 0.0  ;;  %v1710_v36 = vsel %vm760_vm3, %v1705_v32, 0.0  ;;  %v1712_v38 = vsel %vm760_vm3, %v1706_v18, 0.0  ;;  %v2535_v31 = vld [vmem:[%s3400_s0 + $0x18] sm:$0xff] }
 0xa11   :  { %v1709_v35 = vadd.f32 %v1708_v24, %v1707_v34  ;;  %v2536_v34 = vld [vmem:[%s3400_s0 + $0x20] sm:$0xff] }
 0xa13   :  { %v1711_v37 = vadd.f32 %v1710_v36, %v1709_v35  ;;  %v2537_v36 = vld [vmem:[%s3400_s0 + $0x28] sm:$0xff] }
 0xa15   :  { %v1713_v39 = vadd.f32 %v1712_v38, %v1711_v37 }
 0xa17   :  { %v1714_v40 = vrot.slane %v1713_v39, 4 }
 0xa19   :  { %v1715_v41 = vadd.f32 %v1714_v40, %v1713_v39  ;;  %v2538_v39 = vld [vmem:[%s3400_s0 + $0x30] sm:$0xff] }
 0xa1b   :  { %v1716_v42 = vrot.slane %v1715_v41, 2 }
 0xa1d   :  { %v1717_v43 = vadd.f32 %v1716_v42, %v1715_v41  ;;  %v2539_v42 = vld [vmem:[%s3400_s0 + $0x38] sm:$0xff] }
 0xa1f   :  { %v1718_v19 = vrot.slane %v1717_v43, 1 }
 0xa21   :  { %v1719_v44 = vadd.f32 %v1718_v19, %v1717_v43 }
 0xa23   :  { %2469 = vmatmul.mubr.msk.f32.vlgmr.msra.gmra.mxu1 %vm760_vm3, %v1719_v44 }
 0xae3   :  { %v1789_v20 = vpop.f32.mrf.mxu1 }
 0xae4   :  { %v1793_v45 = vmul.f32 0.001953125, %v1789_v20 }
 0xae5   :  { %v2470_v46 = vpop.f32.mrf.mxu1 }
 0xae6   :  { %v1795_v47 = vadd.f32 1e-05, %v1793_v45 }
 0xae8   :  { %2530 = vrsqrt.f32 %v1795_v47 }
 0xaf5   :  { %v2531_v14 = vpop.eup %2530 }
 0xaf6   :  { %v1797_v49 = vmul.f32 %v2531_v14, %v1794_v48 }
 0xaf8   :  { %2474 = vmatmul.mubr.msk.f32.vlgmr.msra.gmra.mxu0 %vm848_vm4, %v1797_v49  ;;  %v1799_v16 = vmul.f32 %v1797_v49, %v1621_v25 }
 0xaf9   :  { %2477 = vmatpush3.msk.msra.mxu0 %vm852_vm2, %v3074_v0  ;;  %2478 = vmatprep.mubr.msk.f32.mxu0 %vm2541_vm1, %v2540_v62  ;;  %v2517_v0 = vld [vmem:[%s3412_s3 + $0x20] ss:$8 sps:$4 sm:$0xff]   ;;  %v2522_v62 = vld [vmem:[%s3412_s3 + $0x14] ss:$8 sps:$4 sm:$0xff]  }
 0xafa   :  { %v1800_v17 = vsub.f32 %v1798_v51, %v1799_v16  ;;  %2031 = vmatprep.subr.bf16.mxu0 %v2516_v50 }
 0xafc   :  { %2479 = vmatmul.mubr.msk.f32.vlgmr.msra.gmra.mxu0 %vm848_vm4, %v1800_v17 }
 0xafd   :  { %2032 = vmatpush1.bf16.msra.mxu0 %v2514_v52  ;;  %2055 = vmatprep.mubr.bf16.mxu0 %v2542_v33 }
 0xafe   :  { %2033 = vmatprep.subr.bf16.mxu0 %v2519_v23 }
 0xb01   :  { %2034 = vmatpush1.bf16.msra.mxu0 %v2517_v0 }
 0xb02   :  { %2035 = vmatprep.subr.bf16.mxu0 %v2522_v62 }
 0xb05   :  { %2036 = vmatpush1.bf16.msra.mxu0 %v2520_v53 }
 0xb06   :  { %2037 = vmatprep.subr.bf16.mxu0 %v2525_v54 }
 0xb09   :  { %2038 = vmatpush1.bf16.msra.mxu0 %v2523_v9 }
 0xbb8   :  { %v1870_v3 = vpop.f32.mrf.mxu0 }
 0xbb9   :  { %v1950_v1 = vrot.slane %v1870_v3, %v2925_v2 }
 0xbba   :  { %v2475_v4 = vpop.f32.mrf.mxu0 }
 0xbbb   :  { %v1951_v6 = vmul.f32 %v1950_v1, %v3257_v26  ;;  %v1952_v8 = vmul.f32 %v1950_v1, %v3259_v15  ;;  %v1953_v61 = vmul.f32 %v1950_v1, %v3255_v7  ;;  %v1954_v12 = vmul.f32 %v1950_v1, %v3261_v55  ;;  %v2532_v7 = vld [vmem:[%s3400_s0] sm:$0xff] }
 0xbbc   :  { %v1943_v5 = vpop.f32.mrf.mxu0 }
 0xbbd   :  { %v1958_v10 = vrot.slane %v1943_v5, %v2925_v2 }
 0xbbe   :  { %v2480_v11 = vpop.f32.mrf.mxu0 }
 0xbbf   :  { %v1959_v59 = vadd.f32 %v1958_v10, %v1951_v6  ;;  %v1960_v60 = vadd.f32 %v1958_v10, %v1952_v8  ;;  %v1961_v25 = vadd.f32 %v1958_v10, %v1953_v61  ;;  %v1962_v28 = vadd.f32 %v1958_v10, %v1954_v12 }
 0xbc1   :  { %v1963_v13 = vmax.f32 %v1959_v59, 0.0  ;;  %v1964_v22 = vmax.f32 %v1960_v60, 0.0  ;;  %v1965_v26 = vmax.f32 %v1961_v25, 0.0  ;;  %v1966_v15 = vmax.f32 %v1962_v28, 0.0 }
 0xbc3   :  { %v1967_v56 = vpack.c.bf16 %v1964_v22, %v1963_v13  ;;  %v1968_v21 = vpack.c.bf16 %v1966_v15, %v1965_v26 }
 0xbc5   :  { %2173 = vmatmul.mubr.msk.bf16.vlgmr.msra.gmra.mxu0 %vm760_vm3, %v1967_v56 }
 0xbc6   :  { %2065 = vmatprep.mubr.bf16.mxu0 %v2542_v33  ;;  %v2533_v33 = vld [vmem:[%s3400_s0 + $0x8] sm:$0xff] }
 0xbcd   :  { %2174 = vmatmul.mubr.msk.bf16.gmra.mxu0 %vm760_vm3, %v1968_v21 }
 0xc85   :  { %v2057_v2 = vpop.f32.mrf.mxu0 }
 0xc86   :  { %v2076_v55 = vadd.f32 %v2532_v7, %v2057_v2 }
 0xc87   :  { %v2059_v27 = vpop.f32.mrf.mxu0 }
 0xc88   :  { %2084 = vst [vmem:[%s3415_s16] sm:$0xff] %v2076_v55  ;;  %v2077_v57 = vadd.f32 %v2533_v33, %v2059_v27 }
 0xc89   :  { %v2061_v58 = vpop.f32.mrf.mxu0 }
 0xc8a   :  { %2085 = vst [vmem:[%s3415_s16 + $0x8] sm:$0xff] %v2077_v57  ;;  %v2078_v63 = vadd.f32 %v2534_v29, %v2061_v58 }
 0xc8b   :  { %v2063_v30 = vpop.f32.mrf.mxu0 }
 0xc8c   :  { %2086 = vst [vmem:[%s3415_s16 + $0x10] sm:$0xff] %v2078_v63  ;;  %v2079_v32 = vadd.f32 %v2535_v31, %v2063_v30 }
 0xc8d   :  { %v2067_v18 = vpop.f32.mrf.mxu0 }
 0xc8e   :  { %2087 = vst [vmem:[%s3415_s16 + $0x18] sm:$0xff] %v2079_v32  ;;  %v2080_v24 = vadd.f32 %v2536_v34, %v2067_v18 }
 0xc8f   :  { %v2069_v35 = vpop.f32.mrf.mxu0 }
 0xc90   :  { %2088 = vst [vmem:[%s3415_s16 + $0x20] sm:$0xff] %v2080_v24  ;;  %v2081_v37 = vadd.f32 %v2537_v36, %v2069_v35 }
 0xc91   :  { %v2071_v38 = vpop.f32.mrf.mxu0 }
 0xc92   :  { %2089 = vst [vmem:[%s3415_s16 + $0x28] sm:$0xff] %v2081_v37  ;;  %v2082_v40 = vadd.f32 %v2538_v39, %v2071_v38 }
 0xc93   :  { %v2073_v41 = vpop.f32.mrf.mxu0 }
 0xc94   :  { %2090 = vst [vmem:[%s3415_s16 + $0x30] sm:$0xff] %v2082_v40  ;;  %v2083_v43 = vadd.f32 %v2539_v42, %v2073_v41 }
 0xc96   :  { %2091 = vst [vmem:[%s3415_s16 + $0x38] sm:$0xff] %v2083_v43 }

</bundles_post_ra>
